<compile_context>
chip_gen: v7x
topology: tpu7x:2x2x1
jax: 0.10.0
libtpu: 0.0.40
codegen_flags: <defaults>
</compile_context>

<pallas_src>
import functools
import numpy as np
import jax
import jax.numpy as jnp
from jax.experimental import pallas as pl
from jax.experimental.pallas import tpu as pltpu

BN_EPS = 1e-5


def _round_up(v, m):
    return (v + m - 1) // m * m


# ------------------------------ Pallas kernel --------------------------------

def _fused_upsample_kernel(x_ref, skip_ref, s1_ref, b1_ref, w1_ref, mt_ref,
                           b2_ref, mask_ref, w3_ref, o_ref, sk_ref, apad_ref,
                           *, guard, slab, ws, row_offsets, tap_offsets):
    """Fused _Upsample forward for one batch element (channel-major layout).

    x_ref    : (1, Cin, Hx*Wx)   bf16  low-res input, pre-scaled by folded BN2 scale
    skip_ref : (1, Cs,  Hs*Ws)   f32   skip input, dense (no wrapper pad)
    s1/b1    : (Cs, 1)           f32   folded BN1 scale / shift
    w1_ref   : (Cm, Cs)          bf16  1x1 bottleneck weight, BN2 scale folded in
    mt_ref   : (Hx*Wx, slab)     bf16  bilinear kron(Wh, Ww), columns on the slab
    b2_ref   : (Cm, 1)           f32   folded BN2 shift
    mask_ref : (1, slab)         f32   1.0 at real pixels, 0.0 on the pad ring
    w3_ref   : (9, Co, Cm)       bf16  3x3 conv weight, one (Co, Cm) slice per tap
    o_ref    : (1, Co, slab)     f32   conv output on the slab (lane-dense)
    sk_ref   : (Cs, slab)        f32   scratch: skip placed on the padded grid
    apad_ref : (Cm, Lpad)        bf16  scratch: guarded post-BN/ReLU activation
    """
    cs = sk_ref.shape[0]
    cm = apad_ref.shape[0]
    lpad = apad_ref.shape[1]

    # (a) zero the pad columns / guard lanes (every step: cheap, lane-aligned,
    #     and keeps correctness when the batch axis is split across TensorCores).
    sk_ref[...] = jnp.zeros((cs, slab), sk_ref.dtype)
    apad_ref[:, 0:guard] = jnp.zeros((cm, guard), apad_ref.dtype)
    apad_ref[:, guard + slab:lpad] = jnp.zeros((cm, lpad - guard - slab),
                                               apad_ref.dtype)

    # (b) place dense skip rows onto the padded-column slab (in-VMEM, no wrapper
    #     pad / extra HBM pass over the skip tensor).
    for h, off in enumerate(row_offsets):
        sk_ref[:, off:off + ws] = skip_ref[0, :, h * ws:(h + 1) * ws]

    # (c) bottleneck: BN1(folded) + ReLU + 1x1 conv (BN2 scale pre-folded into w1).
    a1 = jnp.maximum(sk_ref[...] * s1_ref[...] + b1_ref[...], 0.0)
    skip_b = jnp.dot(w1_ref[...], a1.astype(jnp.bfloat16),
                     preferred_element_type=jnp.float32)

    # (d) bilinear resize (align_corners=False) as one MXU matmul onto the slab.
    up = jnp.dot(x_ref[0], mt_ref[...], preferred_element_type=jnp.float32)

    # (e) add + BN2 shift + ReLU; the mask zeroes the pad ring, which is exactly
    #     the 3x3 conv's zero padding.  One lane-aligned bf16 store.
    act = jnp.maximum(up + skip_b + b2_ref[...], 0.0) * mask_ref[...]
    apad_ref[:, guard:guard + slab] = act.astype(jnp.bfloat16)

    # (f) 3x3 conv: nine accumulating MXU matmuls over statically shifted slab
    #     views of the padded activation (no im2col buffer, no copy loop).
    acc = jnp.zeros(o_ref.shape[1:], jnp.float32)
    for k, off in enumerate(tap_offsets):
        acc = acc + jnp.dot(w3_ref[k], apad_ref[:, off:off + slab],
                            preferred_element_type=jnp.float32)
    o_ref[0] = acc


# ------------------------------ helpers / wrapper -----------------------------

def _bilinear_matrix(out_size, in_size):
    """PyTorch F.interpolate(mode='bilinear', align_corners=False) weights."""
    M = np.zeros((out_size, in_size), dtype=np.float32)
    if in_size == 1:
        M[:, 0] = 1.0
        return M
    scale = in_size / out_size
    for i in range(out_size):
        src = max((i + 0.5) * scale - 0.5, 0.0)
        p0 = min(int(np.floor(src)), in_size - 1)
        frac = src - p0
        p1 = min(p0 + 1, in_size - 1)
        M[i, p0] += 1.0 - frac
        M[i, p1] += frac
    return M


def fold_bn(gamma, beta, mean, var):
    scale = gamma * jax.lax.rsqrt(var + BN_EPS)
    shift = beta - mean * scale
    return scale, shift


def upsample_forward(params, x_nchw, skip_nchw):
    """_Upsample.forward (eval mode, drop_rate=0), fully fused in one pallas_call."""
    N, Cin, Hx, Wx = x_nchw.shape
    _, Cs, Hs, Ws = skip_nchw.shape
    Cm = params['w1'].shape[0]              # num_maps_in
    Co = params['w3'].shape[0]              # num_maps_out
    assert Cin == Cm

    # Flat padded grid: each row gets 1 zero column left & right (Wp = Ws + 2),
    # the slab (Hs real rows x Wp) is rounded up to a lane multiple (unmasked
    # stores), and `guard` zero lanes above/below the slab inside the activation
    # scratch provide the conv's vertical zero padding.
    Wp = Ws + 2
    c0 = 1
    slab = _round_up(Hs * Wp, 128)
    guard = max(128, _round_up(Wp + 1, 128))
    Lpad = guard + slab + guard
    row_offsets = tuple(h * Wp + c0 for h in range(Hs))
    tap_offsets = tuple(guard + oy * Wp + ox
                        for oy in (-1, 0, 1) for ox in (-1, 0, 1))

    # eval-mode BN folded; BN2 scale folded into w1 (skip path) and x (residual).
    s1, b1 = fold_bn(params['bn1_gamma'], params['bn1_beta'],
                     params['bn1_mean'], params['bn1_var'])
    s2, b2 = fold_bn(params['bn2_gamma'], params['bn2_beta'],
                     params['bn2_mean'], params['bn2_var'])
    w1s = (params['w1'][:, :, 0, 0] * s2[:, None]).astype(jnp.bfloat16)    # (Cm, Cs)
    w3 = jnp.transpose(params['w3'], (2, 3, 0, 1)).reshape(9, Co, Cm)
    w3 = w3.astype(jnp.bfloat16)                                           # (9, Co, Cm)

    # bilinear kron(Wh, Ww) with columns placed directly on the slab; real-pixel
    # mask (host-side numpy constants).
    # TODO(synk): replace with separable / gather+lerp resize + H-tiled grid at
    #             production feature-map sizes (kron grows quadratically).
    Wh = _bilinear_matrix(Hs, Hx)
    Ww = _bilinear_matrix(Ws, Wx)
    kron = np.einsum('hp,wq->hwpq', Wh, Ww).reshape(Hs * Ws, Hx * Wx)
    mt_np = np.zeros((Hx * Wx, slab), np.float32)
    mask_np = np.zeros((1, slab), np.float32)
    for h in range(Hs):
        col = h * Wp + c0
        mt_np[:, col:col + Ws] = kron[h * Ws:(h + 1) * Ws, :].T
        mask_np[0, col:col + Ws] = 1.0
    mt = jnp.asarray(mt_np).astype(jnp.bfloat16)                           # (HxWx, slab)
    mask = jnp.asarray(mask_np)                                            # (1, slab)

    # x: pre-scaled by folded BN2 scale and pre-cast to bf16 (half-width DMA);
    # skip: dense, no wrapper pad (placement happens in-VMEM inside the kernel).
    x2 = (x_nchw * s2[None, :, None, None]).astype(jnp.bfloat16)
    x2 = x2.reshape(N, Cin, Hx * Wx)
    skip2 = skip_nchw.reshape(N, Cs, Hs * Ws)

    kernel = functools.partial(_fused_upsample_kernel, guard=guard, slab=slab,
                               ws=Ws, row_offsets=row_offsets,
                               tap_offsets=tap_offsets)
    out = pl.pallas_call(
        kernel,
        out_shape=jax.ShapeDtypeStruct((N, Co, slab), jnp.float32),
        grid=(N,),
        in_specs=[
            pl.BlockSpec((1, Cin, Hx * Wx), lambda n: (n, 0, 0)),
            pl.BlockSpec((1, Cs, Hs * Ws), lambda n: (n, 0, 0)),
            pl.BlockSpec((Cs, 1), lambda n: (0, 0)),
            pl.BlockSpec((Cs, 1), lambda n: (0, 0)),
            pl.BlockSpec((Cm, Cs), lambda n: (0, 0)),
            pl.BlockSpec((Hx * Wx, slab), lambda n: (0, 0)),
            pl.BlockSpec((Cm, 1), lambda n: (0, 0)),
            pl.BlockSpec((1, slab), lambda n: (0, 0)),
            pl.BlockSpec((9, Co, Cm), lambda n: (0, 0, 0)),
        ],
        out_specs=pl.BlockSpec((1, Co, slab), lambda n: (n, 0, 0)),
        scratch_shapes=[pltpu.VMEM((Cs, slab), jnp.float32),
                        pltpu.VMEM((Cm, Lpad), jnp.bfloat16)],
        compiler_params=pltpu.CompilerParams(
            dimension_semantics=("parallel",),          # batch across TCs
            vmem_limit_bytes=32 * 1024 * 1024),
    )(x2, skip2, s1.reshape(Cs, 1), b1.reshape(Cs, 1), w1s, mt,
      b2.reshape(Cm, 1), mask, w3)

    # drop the slab rounding + pad columns -> NCHW (already channel-major).
    # TODO(synk): a consumer that accepts the (N, Co, Hs, Wp) padded layout
    #             could skip this XLA crop pass entirely.
    out = out[:, :, :Hs * Wp].reshape(N, Co, Hs, Wp)
    return out[:, :, :, c0:c0 + Ws]


# ------------------------------ params / reference ----------------------------

def make_params(key, num_maps_in, skip_maps_in, num_maps_out):
    ks = jax.random.split(key, 10)
    p = {}
    # bottleneck = _BNReluConv(skip_maps_in, num_maps_in, k=1)
    p['bn1_gamma'] = 1.0 + 0.1 * jax.random.normal(ks[0], (skip_maps_in,), jnp.float32)
    p['bn1_beta'] = 0.1 * jax.random.normal(ks[1], (skip_maps_in,), jnp.float32)
    p['bn1_mean'] = 0.1 * jax.random.normal(ks[2], (skip_maps_in,), jnp.float32)
    p['bn1_var'] = 0.5 + jnp.abs(jax.random.normal(ks[3], (skip_maps_in,), jnp.float32))
    p['w1'] = 0.1 * jax.random.normal(ks[4], (num_maps_in, skip_maps_in, 1, 1), jnp.float32)  # OIHW
    # blend_conv = _BNReluConv(num_maps_in, num_maps_out, k=3)
    p['bn2_gamma'] = 1.0 + 0.1 * jax.random.normal(ks[5], (num_maps_in,), jnp.float32)
    p['bn2_beta'] = 0.1 * jax.random.normal(ks[6], (num_maps_in,), jnp.float32)
    p['bn2_mean'] = 0.1 * jax.random.normal(ks[7], (num_maps_in,), jnp.float32)
    p['bn2_var'] = 0.5 + jnp.abs(jax.random.normal(ks[8], (num_maps_in,), jnp.float32))
    p['w3'] = 0.1 * jax.random.normal(ks[9], (num_maps_out, num_maps_in, 3, 3), jnp.float32)  # OIHW
    return p


def upsample_reference(params, x_nchw, skip_nchw):
    """Pure-JAX/XLA reference (same math, f32 end-to-end) for validation."""
    x = jnp.transpose(x_nchw, (0, 2, 3, 1))
    skip = jnp.transpose(skip_nchw, (0, 2, 3, 1))
    s1, b1 = fold_bn(params['bn1_gamma'], params['bn1_beta'],
                     params['bn1_mean'], params['bn1_var'])
    a1 = jnp.maximum(skip * s1 + b1, 0.0)
    skip_b = jnp.einsum('nhwc,cd->nhwd', a1, params['w1'][:, :, 0, 0].T)
    Hs, Ws = skip_b.shape[1], skip_b.shape[2]
    Wh = jnp.asarray(_bilinear_matrix(Hs, x.shape[1]))
    Ww = jnp.asarray(_bilinear_matrix(Ws, x.shape[2]))
    up = jnp.einsum('hp,wq,npqc->nhwc', Wh, Ww, x)
    s2, b2 = fold_bn(params['bn2_gamma'], params['bn2_beta'],
                     params['bn2_mean'], params['bn2_var'])
    a2 = jnp.maximum((up + skip_b) * s2 + b2, 0.0)
    w_hwio = jnp.transpose(params['w3'], (2, 3, 1, 0))
    y = jax.lax.conv_general_dilated(a2, w_hwio, (1, 1), 'SAME',
                                     dimension_numbers=('NHWC', 'HWIO', 'NHWC'))
    return jnp.transpose(y, (0, 3, 1, 2))


if __name__ == "__main__":
    num_maps_in, skip_maps_in, num_maps_out = 32, 16, 24
    N, Hx, Wx, Hs, Ws = 2, 8, 8, 16, 16

    key = jax.random.PRNGKey(0)
    kx, ks, kp = jax.random.split(key, 3)
    x = jax.random.normal(kx, (N, num_maps_in, Hx, Wx), jnp.float32)      # NCHW
    skip = jax.random.normal(ks, (N, skip_maps_in, Hs, Ws), jnp.float32)  # NCHW
    params = make_params(kp, num_maps_in, skip_maps_in, num_maps_out)

    fwd = jax.jit(upsample_forward)
    ref = jax.jit(upsample_reference)

    y = jax.block_until_ready(fwd(params, x, skip))
    assert y.shape == (N, num_maps_out, Hs, Ws), y.shape

    y_ref = jax.block_until_ready(ref(params, x, skip))
    # bf16 MXU operands with f32 accumulation -> slightly looser tolerance.
    np.testing.assert_allclose(np.asarray(y), np.asarray(y_ref),
                               rtol=5e-2, atol=5e-2)
    print("KERNEL_OK")
</pallas_src>

<mosaic_0001>
module attributes {stable_mosaic.version = 11 : i64} {
  func.func @_fused_upsample_kernel(%arg0: i32, %arg1: memref<1x32x64xbf16, #tpu.memory_space<vmem>>, %arg2: memref<1x16x256xf32, #tpu.memory_space<vmem>>, %arg3: memref<16x1xf32, #tpu.memory_space<vmem>>, %arg4: memref<16x1xf32, #tpu.memory_space<vmem>>, %arg5: memref<32x16xbf16, #tpu.memory_space<vmem>>, %arg6: memref<64x384xbf16, #tpu.memory_space<vmem>>, %arg7: memref<32x1xf32, #tpu.memory_space<vmem>>, %arg8: memref<1x384xf32, #tpu.memory_space<vmem>>, %arg9: memref<9x24x32xbf16, #tpu.memory_space<vmem>>, %arg10: memref<1x24x384xf32, #tpu.memory_space<vmem>>, %arg11: memref<16x384xf32, #tpu.memory_space<vmem>>, %arg12: memref<32x640xbf16, #tpu.memory_space<vmem>>) attributes {dimension_semantics = [#tpu.dimension_semantics<parallel>], iteration_bounds = array<i64: 2>, scalar_prefetch = 0 : i64, scratch_operands = 2 : i64, tpu.core_type = #tpu.core_type<tc>, window_params = [{transform_indices = @transform_0, window_bounds = array<i64: 1, 32, 64>}, {transform_indices = @transform_1, window_bounds = array<i64: 1, 16, 256>}, {pipeline_mode = #tpu.pipeline_mode<synchronous>, transform_indices = @transform_2, window_bounds = array<i64: 16, 1>}, {pipeline_mode = #tpu.pipeline_mode<synchronous>, transform_indices = @transform_3, window_bounds = array<i64: 16, 1>}, {pipeline_mode = #tpu.pipeline_mode<synchronous>, transform_indices = @transform_4, window_bounds = array<i64: 32, 16>}, {pipeline_mode = #tpu.pipeline_mode<synchronous>, transform_indices = @transform_5, window_bounds = array<i64: 64, 384>}, {pipeline_mode = #tpu.pipeline_mode<synchronous>, transform_indices = @transform_6, window_bounds = array<i64: 32, 1>}, {pipeline_mode = #tpu.pipeline_mode<synchronous>, transform_indices = @transform_7, window_bounds = array<i64: 1, 384>}, {pipeline_mode = #tpu.pipeline_mode<synchronous>, transform_indices = @transform_8, window_bounds = array<i64: 9, 24, 32>}, {transform_indices = @transform_9, window_bounds = array<i64: 1, 24, 384>}]} {
    %cst = arith.constant 0.000000e+00 : f32
    %0 = vector.broadcast %cst : f32 to vector<16x384xf32>
    %c0 = arith.constant 0 : index
    %c0_0 = arith.constant 0 : index
    %1 = vector.load %arg11[%c0, %c0_0] : memref<16x384xf32, #tpu.memory_space<vmem>>, vector<16x384xf32>
    tpu.vector_store %arg11[%c0, %c0_0], %0 {strides = array<i32>} : memref<16x384xf32, #tpu.memory_space<vmem>>, vector<16x384xf32>,
    %cst_1 = arith.constant 0.000000e+00 : bf16
    %2 = vector.broadcast %cst_1 : bf16 to vector<32x128xbf16>
    %c0_2 = arith.constant 0 : index
    %c0_3 = arith.constant 0 : index
    %3 = vector.load %arg12[%c0_2, %c0_3] : memref<32x640xbf16, #tpu.memory_space<vmem>>, vector<32x128xbf16>
    tpu.vector_store %arg12[%c0_2, %c0_3], %2 {strides = array<i32>} : memref<32x640xbf16, #tpu.memory_space<vmem>>, vector<32x128xbf16>,
    %cst_4 = arith.constant 0.000000e+00 : bf16
    %4 = vector.broadcast %cst_4 : bf16 to vector<32x128xbf16>
    %c0_5 = arith.constant 0 : index
    %c512 = arith.constant 512 : index
    %5 = vector.load %arg12[%c0_5, %c512] : memref<32x640xbf16, #tpu.memory_space<vmem>>, vector<32x128xbf16>
    tpu.vector_store %arg12[%c0_5, %c512], %4 {strides = array<i32>} : memref<32x640xbf16, #tpu.memory_space<vmem>>, vector<32x128xbf16>,
    %c0_6 = arith.constant 0 : index
    %c0_7 = arith.constant 0 : index
    %c0_8 = arith.constant 0 : index
    %6 = vector.load %arg2[%c0_6, %c0_7, %c0_8] : memref<1x16x256xf32, #tpu.memory_space<vmem>>, vector<1x16x16xf32>
    %7 = vector.shape_cast %6 : vector<1x16x16xf32> to vector<16x16xf32>
    %c0_9 = arith.constant 0 : index
    %c1 = arith.constant 1 : index
    %8 = vector.load %arg11[%c0_9, %c1] : memref<16x384xf32, #tpu.memory_space<vmem>>, vector<16x16xf32>
    tpu.vector_store %arg11[%c0_9, %c1], %7 {strides = array<i32>} : memref<16x384xf32, #tpu.memory_space<vmem>>, vector<16x16xf32>,
    %c0_10 = arith.constant 0 : index
    %c0_11 = arith.constant 0 : index
    %c16 = arith.constant 16 : index
    %9 = vector.load %arg2[%c0_10, %c0_11, %c16] : memref<1x16x256xf32, #tpu.memory_space<vmem>>, vector<1x16x16xf32>
    %10 = vector.shape_cast %9 : vector<1x16x16xf32> to vector<16x16xf32>
    %c0_12 = arith.constant 0 : index
    %c19 = arith.constant 19 : index
    %11 = vector.load %arg11[%c0_12, %c19] : memref<16x384xf32, #tpu.memory_space<vmem>>, vector<16x16xf32>
    tpu.vector_store %arg11[%c0_12, %c19], %10 {strides = array<i32>} : memref<16x384xf32, #tpu.memory_space<vmem>>, vector<16x16xf32>,
    %c0_13 = arith.constant 0 : index
    %c0_14 = arith.constant 0 : index
    %c32 = arith.constant 32 : index
    %12 = vector.load %arg2[%c0_13, %c0_14, %c32] : memref<1x16x256xf32, #tpu.memory_space<vmem>>, vector<1x16x16xf32>
    %13 = vector.shape_cast %12 : vector<1x16x16xf32> to vector<16x16xf32>
    %c0_15 = arith.constant 0 : index
    %c37 = arith.constant 37 : index
    %14 = vector.load %arg11[%c0_15, %c37] : memref<16x384xf32, #tpu.memory_space<vmem>>, vector<16x16xf32>
    tpu.vector_store %arg11[%c0_15, %c37], %13 {strides = array<i32>} : memref<16x384xf32, #tpu.memory_space<vmem>>, vector<16x16xf32>,
    %c0_16 = arith.constant 0 : index
    %c0_17 = arith.constant 0 : index
    %c48 = arith.constant 48 : index
    %15 = vector.load %arg2[%c0_16, %c0_17, %c48] : memref<1x16x256xf32, #tpu.memory_space<vmem>>, vector<1x16x16xf32>
    %16 = vector.shape_cast %15 : vector<1x16x16xf32> to vector<16x16xf32>
    %c0_18 = arith.constant 0 : index
    %c55 = arith.constant 55 : index
    %17 = vector.load %arg11[%c0_18, %c55] : memref<16x384xf32, #tpu.memory_space<vmem>>, vector<16x16xf32>
    tpu.vector_store %arg11[%c0_18, %c55], %16 {strides = array<i32>} : memref<16x384xf32, #tpu.memory_space<vmem>>, vector<16x16xf32>,
    %c0_19 = arith.constant 0 : index
    %c0_20 = arith.constant 0 : index
    %c64 = arith.constant 64 : index
    %18 = vector.load %arg2[%c0_19, %c0_20, %c64] : memref<1x16x256xf32, #tpu.memory_space<vmem>>, vector<1x16x16xf32>
    %19 = vector.shape_cast %18 : vector<1x16x16xf32> to vector<16x16xf32>
    %c0_21 = arith.constant 0 : index
    %c73 = arith.constant 73 : index
    %20 = vector.load %arg11[%c0_21, %c73] : memref<16x384xf32, #tpu.memory_space<vmem>>, vector<16x16xf32>
    tpu.vector_store %arg11[%c0_21, %c73], %19 {strides = array<i32>} : memref<16x384xf32, #tpu.memory_space<vmem>>, vector<16x16xf32>,
    %c0_22 = arith.constant 0 : index
    %c0_23 = arith.constant 0 : index
    %c80 = arith.constant 80 : index
    %21 = vector.load %arg2[%c0_22, %c0_23, %c80] : memref<1x16x256xf32, #tpu.memory_space<vmem>>, vector<1x16x16xf32>
    %22 = vector.shape_cast %21 : vector<1x16x16xf32> to vector<16x16xf32>
    %c0_24 = arith.constant 0 : index
    %c91 = arith.constant 91 : index
    %23 = vector.load %arg11[%c0_24, %c91] : memref<16x384xf32, #tpu.memory_space<vmem>>, vector<16x16xf32>
    tpu.vector_store %arg11[%c0_24, %c91], %22 {strides = array<i32>} : memref<16x384xf32, #tpu.memory_space<vmem>>, vector<16x16xf32>,
    %c0_25 = arith.constant 0 : index
    %c0_26 = arith.constant 0 : index
    %c96 = arith.constant 96 : index
    %24 = vector.load %arg2[%c0_25, %c0_26, %c96] : memref<1x16x256xf32, #tpu.memory_space<vmem>>, vector<1x16x16xf32>
    %25 = vector.shape_cast %24 : vector<1x16x16xf32> to vector<16x16xf32>
    %c0_27 = arith.constant 0 : index
    %c109 = arith.constant 109 : index
    %26 = vector.load %arg11[%c0_27, %c109] : memref<16x384xf32, #tpu.memory_space<vmem>>, vector<16x16xf32>
    tpu.vector_store %arg11[%c0_27, %c109], %25 {strides = array<i32>} : memref<16x384xf32, #tpu.memory_space<vmem>>, vector<16x16xf32>,
    %c0_28 = arith.constant 0 : index
    %c0_29 = arith.constant 0 : index
    %c112 = arith.constant 112 : index
    %27 = vector.load %arg2[%c0_28, %c0_29, %c112] : memref<1x16x256xf32, #tpu.memory_space<vmem>>, vector<1x16x16xf32>
    %28 = vector.shape_cast %27 : vector<1x16x16xf32> to vector<16x16xf32>
    %c0_30 = arith.constant 0 : index
    %c127 = arith.constant 127 : index
    %29 = vector.load %arg11[%c0_30, %c127] : memref<16x384xf32, #tpu.memory_space<vmem>>, vector<16x16xf32>
    tpu.vector_store %arg11[%c0_30, %c127], %28 {strides = array<i32>} : memref<16x384xf32, #tpu.memory_space<vmem>>, vector<16x16xf32>,
    %c0_31 = arith.constant 0 : index
    %c0_32 = arith.constant 0 : index
    %c128 = arith.constant 128 : index
    %30 = vector.load %arg2[%c0_31, %c0_32, %c128] : memref<1x16x256xf32, #tpu.memory_space<vmem>>, vector<1x16x16xf32>
    %31 = vector.shape_cast %30 : vector<1x16x16xf32> to vector<16x16xf32>
    %c0_33 = arith.constant 0 : index
    %c145 = arith.constant 145 : index
    %32 = vector.load %arg11[%c0_33, %c145] : memref<16x384xf32, #tpu.memory_space<vmem>>, vector<16x16xf32>
    tpu.vector_store %arg11[%c0_33, %c145], %31 {strides = array<i32>} : memref<16x384xf32, #tpu.memory_space<vmem>>, vector<16x16xf32>,
    %c0_34 = arith.constant 0 : index
    %c0_35 = arith.constant 0 : index
    %c144 = arith.constant 144 : index
    %33 = vector.load %arg2[%c0_34, %c0_35, %c144] : memref<1x16x256xf32, #tpu.memory_space<vmem>>, vector<1x16x16xf32>
    %34 = vector.shape_cast %33 : vector<1x16x16xf32> to vector<16x16xf32>
    %c0_36 = arith.constant 0 : index
    %c163 = arith.constant 163 : index
    %35 = vector.load %arg11[%c0_36, %c163] : memref<16x384xf32, #tpu.memory_space<vmem>>, vector<16x16xf32>
    tpu.vector_store %arg11[%c0_36, %c163], %34 {strides = array<i32>} : memref<16x384xf32, #tpu.memory_space<vmem>>, vector<16x16xf32>,
    %c0_37 = arith.constant 0 : index
    %c0_38 = arith.constant 0 : index
    %c160 = arith.constant 160 : index
    %36 = vector.load %arg2[%c0_37, %c0_38, %c160] : memref<1x16x256xf32, #tpu.memory_space<vmem>>, vector<1x16x16xf32>
    %37 = vector.shape_cast %36 : vector<1x16x16xf32> to vector<16x16xf32>
    %c0_39 = arith.constant 0 : index
    %c181 = arith.constant 181 : index
    %38 = vector.load %arg11[%c0_39, %c181] : memref<16x384xf32, #tpu.memory_space<vmem>>, vector<16x16xf32>
    tpu.vector_store %arg11[%c0_39, %c181], %37 {strides = array<i32>} : memref<16x384xf32, #tpu.memory_space<vmem>>, vector<16x16xf32>,
    %c0_40 = arith.constant 0 : index
    %c0_41 = arith.constant 0 : index
    %c176 = arith.constant 176 : index
    %39 = vector.load %arg2[%c0_40, %c0_41, %c176] : memref<1x16x256xf32, #tpu.memory_space<vmem>>, vector<1x16x16xf32>
    %40 = vector.shape_cast %39 : vector<1x16x16xf32> to vector<16x16xf32>
    %c0_42 = arith.constant 0 : index
    %c199 = arith.constant 199 : index
    %41 = vector.load %arg11[%c0_42, %c199] : memref<16x384xf32, #tpu.memory_space<vmem>>, vector<16x16xf32>
    tpu.vector_store %arg11[%c0_42, %c199], %40 {strides = array<i32>} : memref<16x384xf32, #tpu.memory_space<vmem>>, vector<16x16xf32>,
    %c0_43 = arith.constant 0 : index
    %c0_44 = arith.constant 0 : index
    %c192 = arith.constant 192 : index
    %42 = vector.load %arg2[%c0_43, %c0_44, %c192] : memref<1x16x256xf32, #tpu.memory_space<vmem>>, vector<1x16x16xf32>
    %43 = vector.shape_cast %42 : vector<1x16x16xf32> to vector<16x16xf32>
    %c0_45 = arith.constant 0 : index
    %c217 = arith.constant 217 : index
    %44 = vector.load %arg11[%c0_45, %c217] : memref<16x384xf32, #tpu.memory_space<vmem>>, vector<16x16xf32>
    tpu.vector_store %arg11[%c0_45, %c217], %43 {strides = array<i32>} : memref<16x384xf32, #tpu.memory_space<vmem>>, vector<16x16xf32>,
    %c0_46 = arith.constant 0 : index
    %c0_47 = arith.constant 0 : index
    %c208 = arith.constant 208 : index
    %45 = vector.load %arg2[%c0_46, %c0_47, %c208] : memref<1x16x256xf32, #tpu.memory_space<vmem>>, vector<1x16x16xf32>
    %46 = vector.shape_cast %45 : vector<1x16x16xf32> to vector<16x16xf32>
    %c0_48 = arith.constant 0 : index
    %c235 = arith.constant 235 : index
    %47 = vector.load %arg11[%c0_48, %c235] : memref<16x384xf32, #tpu.memory_space<vmem>>, vector<16x16xf32>
    tpu.vector_store %arg11[%c0_48, %c235], %46 {strides = array<i32>} : memref<16x384xf32, #tpu.memory_space<vmem>>, vector<16x16xf32>,
    %c0_49 = arith.constant 0 : index
    %c0_50 = arith.constant 0 : index
    %c224 = arith.constant 224 : index
    %48 = vector.load %arg2[%c0_49, %c0_50, %c224] : memref<1x16x256xf32, #tpu.memory_space<vmem>>, vector<1x16x16xf32>
    %49 = vector.shape_cast %48 : vector<1x16x16xf32> to vector<16x16xf32>
    %c0_51 = arith.constant 0 : index
    %c253 = arith.constant 253 : index
    %50 = vector.load %arg11[%c0_51, %c253] : memref<16x384xf32, #tpu.memory_space<vmem>>, vector<16x16xf32>
    tpu.vector_store %arg11[%c0_51, %c253], %49 {strides = array<i32>} : memref<16x384xf32, #tpu.memory_space<vmem>>, vector<16x16xf32>,
    %c0_52 = arith.constant 0 : index
    %c0_53 = arith.constant 0 : index
    %c240 = arith.constant 240 : index
    %51 = vector.load %arg2[%c0_52, %c0_53, %c240] : memref<1x16x256xf32, #tpu.memory_space<vmem>>, vector<1x16x16xf32>
    %52 = vector.shape_cast %51 : vector<1x16x16xf32> to vector<16x16xf32>
    %c0_54 = arith.constant 0 : index
    %c271 = arith.constant 271 : index
    %53 = vector.load %arg11[%c0_54, %c271] : memref<16x384xf32, #tpu.memory_space<vmem>>, vector<16x16xf32>
    tpu.vector_store %arg11[%c0_54, %c271], %52 {strides = array<i32>} : memref<16x384xf32, #tpu.memory_space<vmem>>, vector<16x16xf32>,
    %c0_55 = arith.constant 0 : index
    %c0_56 = arith.constant 0 : index
    %54 = vector.load %arg11[%c0_55, %c0_56] : memref<16x384xf32, #tpu.memory_space<vmem>>, vector<16x384xf32>
    %c0_57 = arith.constant 0 : index
    %c0_58 = arith.constant 0 : index
    %55 = vector.load %arg3[%c0_57, %c0_58] : memref<16x1xf32, #tpu.memory_space<vmem>>, vector<16x1xf32>
    %56 = vector.broadcast %55 : vector<16x1xf32> to vector<16x384xf32>
    %57 = arith.mulf %54, %56 : vector<16x384xf32>
    %c0_59 = arith.constant 0 : index
    %c0_60 = arith.constant 0 : index
    %58 = vector.load %arg4[%c0_59, %c0_60] : memref<16x1xf32, #tpu.memory_space<vmem>>, vector<16x1xf32>
    %59 = vector.broadcast %58 : vector<16x1xf32> to vector<16x384xf32>
    %60 = arith.addf %57, %59 : vector<16x384xf32>
    %cst_61 = arith.constant 0.000000e+00 : f32
    %61 = vector.broadcast %cst_61 : f32 to vector<16x384xf32>
    %62 = arith.maximumf %60, %61 : vector<16x384xf32>
    %c0_62 = arith.constant 0 : index
    %c0_63 = arith.constant 0 : index
    %63 = vector.load %arg5[%c0_62, %c0_63] : memref<32x16xbf16, #tpu.memory_space<vmem>>, vector<32x16xbf16>
    %64 = arith.truncf %62 : vector<16x384xf32> to vector<16x384xbf16>
    %cst_64 = arith.constant dense<0.000000e+00> : vector<32x384xf32>
    %65 = tpu.matmul %63, %64, %cst_64 {dimension_numbers = #tpu.dot_dimension_numbers<[1], [0], [0], [1], [0, 0, 1, 1], [], []>} : vector<32x16xbf16>, vector<16x384xbf16>, vector<32x384xf32> -> vector<32x384xf32>
    %c0_65 = arith.constant 0 : index
    %c0_66 = arith.constant 0 : index
    %c0_67 = arith.constant 0 : index
    %66 = vector.load %arg1[%c0_65, %c0_66, %c0_67] : memref<1x32x64xbf16, #tpu.memory_space<vmem>>, vector<1x32x64xbf16>
    %67 = vector.shape_cast %66 : vector<1x32x64xbf16> to vector<32x64xbf16>
    %c0_68 = arith.constant 0 : index
    %c0_69 = arith.constant 0 : index
    %68 = vector.load %arg6[%c0_68, %c0_69] : memref<64x384xbf16, #tpu.memory_space<vmem>>, vector<64x384xbf16>
    %cst_70 = arith.constant dense<0.000000e+00> : vector<32x384xf32>
    %69 = tpu.matmul %67, %68, %cst_70 {dimension_numbers = #tpu.dot_dimension_numbers<[1], [0], [0], [1], [0, 0, 1, 1], [], []>} : vector<32x64xbf16>, vector<64x384xbf16>, vector<32x384xf32> -> vector<32x384xf32>
    %70 = arith.addf %69, %65 : vector<32x384xf32>
    %c0_71 = arith.constant 0 : index
    %c0_72 = arith.constant 0 : index
    %71 = vector.load %arg7[%c0_71, %c0_72] : memref<32x1xf32, #tpu.memory_space<vmem>>, vector<32x1xf32>
    %72 = vector.broadcast %71 : vector<32x1xf32> to vector<32x384xf32>
    %73 = arith.addf %70, %72 : vector<32x384xf32>
    %cst_73 = arith.constant 0.000000e+00 : f32
    %74 = vector.broadcast %cst_73 : f32 to vector<32x384xf32>
    %75 = arith.maximumf %73, %74 : vector<32x384xf32>
    %c0_74 = arith.constant 0 : index
    %c0_75 = arith.constant 0 : index
    %76 = vector.load %arg8[%c0_74, %c0_75] : memref<1x384xf32, #tpu.memory_space<vmem>>, vector<1x384xf32>
    %77 = vector.broadcast %76 : vector<1x384xf32> to vector<32x384xf32>
    %78 = arith.mulf %75, %77 : vector<32x384xf32>
    %79 = arith.truncf %78 : vector<32x384xf32> to vector<32x384xbf16>
    %c0_76 = arith.constant 0 : index
    %c128_77 = arith.constant 128 : index
    %80 = vector.load %arg12[%c0_76, %c128_77] : memref<32x640xbf16, #tpu.memory_space<vmem>>, vector<32x384xbf16>
    tpu.vector_store %arg12[%c0_76, %c128_77], %79 {strides = array<i32>} : memref<32x640xbf16, #tpu.memory_space<vmem>>, vector<32x384xbf16>,
    %cst_78 = arith.constant 0.000000e+00 : f32
    %81 = vector.broadcast %cst_78 : f32 to vector<24x384xf32>
    %c0_79 = arith.constant 0 : index
    %c0_80 = arith.constant 0 : index
    %c0_81 = arith.constant 0 : index
    %82 = vector.load %arg9[%c0_79, %c0_80, %c0_81] : memref<9x24x32xbf16, #tpu.memory_space<vmem>>, vector<1x24x32xbf16>
    %83 = vector.shape_cast %82 : vector<1x24x32xbf16> to vector<24x32xbf16>
    %c0_82 = arith.constant 0 : index
    %c109_83 = arith.constant 109 : index
    %84 = vector.load %arg12[%c0_82, %c109_83] : memref<32x640xbf16, #tpu.memory_space<vmem>>, vector<32x384xbf16>
    %cst_84 = arith.constant dense<0.000000e+00> : vector<24x384xf32>
    %85 = tpu.matmul %83, %84, %cst_84 {dimension_numbers = #tpu.dot_dimension_numbers<[1], [0], [0], [1], [0, 0, 1, 1], [], []>} : vector<24x32xbf16>, vector<32x384xbf16>, vector<24x384xf32> -> vector<24x384xf32>
    %86 = arith.addf %81, %85 : vector<24x384xf32>
    %c1_85 = arith.constant 1 : index
    %c0_86 = arith.constant 0 : index
    %c0_87 = arith.constant 0 : index
    %87 = vector.load %arg9[%c1_85, %c0_86, %c0_87] : memref<9x24x32xbf16, #tpu.memory_space<vmem>>, vector<1x24x32xbf16>
    %88 = vector.shape_cast %87 : vector<1x24x32xbf16> to vector<24x32xbf16>
    %c0_88 = arith.constant 0 : index
    %c110 = arith.constant 110 : index
    %89 = vector.load %arg12[%c0_88, %c110] : memref<32x640xbf16, #tpu.memory_space<vmem>>, vector<32x384xbf16>
    %cst_89 = arith.constant dense<0.000000e+00> : vector<24x384xf32>
    %90 = tpu.matmul %88, %89, %cst_89 {dimension_numbers = #tpu.dot_dimension_numbers<[1], [0], [0], [1], [0, 0, 1, 1], [], []>} : vector<24x32xbf16>, vector<32x384xbf16>, vector<24x384xf32> -> vector<24x384xf32>
    %91 = arith.addf %86, %90 : vector<24x384xf32>
    %c2 = arith.constant 2 : index
    %c0_90 = arith.constant 0 : index
    %c0_91 = arith.constant 0 : index
    %92 = vector.load %arg9[%c2, %c0_90, %c0_91] : memref<9x24x32xbf16, #tpu.memory_space<vmem>>, vector<1x24x32xbf16>
    %93 = vector.shape_cast %92 : vector<1x24x32xbf16> to vector<24x32xbf16>
    %c0_92 = arith.constant 0 : index
    %c111 = arith.constant 111 : index
    %94 = vector.load %arg12[%c0_92, %c111] : memref<32x640xbf16, #tpu.memory_space<vmem>>, vector<32x384xbf16>
    %cst_93 = arith.constant dense<0.000000e+00> : vector<24x384xf32>
    %95 = tpu.matmul %93, %94, %cst_93 {dimension_numbers = #tpu.dot_dimension_numbers<[1], [0], [0], [1], [0, 0, 1, 1], [], []>} : vector<24x32xbf16>, vector<32x384xbf16>, vector<24x384xf32> -> vector<24x384xf32>
    %96 = arith.addf %91, %95 : vector<24x384xf32>
    %c3 = arith.constant 3 : index
    %c0_94 = arith.constant 0 : index
    %c0_95 = arith.constant 0 : index
    %97 = vector.load %arg9[%c3, %c0_94, %c0_95] : memref<9x24x32xbf16, #tpu.memory_space<vmem>>, vector<1x24x32xbf16>
    %98 = vector.shape_cast %97 : vector<1x24x32xbf16> to vector<24x32xbf16>
    %c0_96 = arith.constant 0 : index
    %c127_97 = arith.constant 127 : index
    %99 = vector.load %arg12[%c0_96, %c127_97] : memref<32x640xbf16, #tpu.memory_space<vmem>>, vector<32x384xbf16>
    %cst_98 = arith.constant dense<0.000000e+00> : vector<24x384xf32>
    %100 = tpu.matmul %98, %99, %cst_98 {dimension_numbers = #tpu.dot_dimension_numbers<[1], [0], [0], [1], [0, 0, 1, 1], [], []>} : vector<24x32xbf16>, vector<32x384xbf16>, vector<24x384xf32> -> vector<24x384xf32>
    %101 = arith.addf %96, %100 : vector<24x384xf32>
    %c4 = arith.constant 4 : index
    %c0_99 = arith.constant 0 : index
    %c0_100 = arith.constant 0 : index
    %102 = vector.load %arg9[%c4, %c0_99, %c0_100] : memref<9x24x32xbf16, #tpu.memory_space<vmem>>, vector<1x24x32xbf16>
    %103 = vector.shape_cast %102 : vector<1x24x32xbf16> to vector<24x32xbf16>
    %c0_101 = arith.constant 0 : index
    %c128_102 = arith.constant 128 : index
    %104 = vector.load %arg12[%c0_101, %c128_102] : memref<32x640xbf16, #tpu.memory_space<vmem>>, vector<32x384xbf16>
    %cst_103 = arith.constant dense<0.000000e+00> : vector<24x384xf32>
    %105 = tpu.matmul %103, %104, %cst_103 {dimension_numbers = #tpu.dot_dimension_numbers<[1], [0], [0], [1], [0, 0, 1, 1], [], []>} : vector<24x32xbf16>, vector<32x384xbf16>, vector<24x384xf32> -> vector<24x384xf32>
    %106 = arith.addf %101, %105 : vector<24x384xf32>
    %c5 = arith.constant 5 : index
    %c0_104 = arith.constant 0 : index
    %c0_105 = arith.constant 0 : index
    %107 = vector.load %arg9[%c5, %c0_104, %c0_105] : memref<9x24x32xbf16, #tpu.memory_space<vmem>>, vector<1x24x32xbf16>
    %108 = vector.shape_cast %107 : vector<1x24x32xbf16> to vector<24x32xbf16>
    %c0_106 = arith.constant 0 : index
    %c129 = arith.constant 129 : index
    %109 = vector.load %arg12[%c0_106, %c129] : memref<32x640xbf16, #tpu.memory_space<vmem>>, vector<32x384xbf16>
    %cst_107 = arith.constant dense<0.000000e+00> : vector<24x384xf32>
    %110 = tpu.matmul %108, %109, %cst_107 {dimension_numbers = #tpu.dot_dimension_numbers<[1], [0], [0], [1], [0, 0, 1, 1], [], []>} : vector<24x32xbf16>, vector<32x384xbf16>, vector<24x384xf32> -> vector<24x384xf32>
    %111 = arith.addf %106, %110 : vector<24x384xf32>
    %c6 = arith.constant 6 : index
    %c0_108 = arith.constant 0 : index
    %c0_109 = arith.constant 0 : index
    %112 = vector.load %arg9[%c6, %c0_108, %c0_109] : memref<9x24x32xbf16, #tpu.memory_space<vmem>>, vector<1x24x32xbf16>
    %113 = vector.shape_cast %112 : vector<1x24x32xbf16> to vector<24x32xbf16>
    %c0_110 = arith.constant 0 : index
    %c145_111 = arith.constant 145 : index
    %114 = vector.load %arg12[%c0_110, %c145_111] : memref<32x640xbf16, #tpu.memory_space<vmem>>, vector<32x384xbf16>
    %cst_112 = arith.constant dense<0.000000e+00> : vector<24x384xf32>
    %115 = tpu.matmul %113, %114, %cst_112 {dimension_numbers = #tpu.dot_dimension_numbers<[1], [0], [0], [1], [0, 0, 1, 1], [], []>} : vector<24x32xbf16>, vector<32x384xbf16>, vector<24x384xf32> -> vector<24x384xf32>
    %116 = arith.addf %111, %115 : vector<24x384xf32>
    %c7 = arith.constant 7 : index
    %c0_113 = arith.constant 0 : index
    %c0_114 = arith.constant 0 : index
    %117 = vector.load %arg9[%c7, %c0_113, %c0_114] : memref<9x24x32xbf16, #tpu.memory_space<vmem>>, vector<1x24x32xbf16>
    %118 = vector.shape_cast %117 : vector<1x24x32xbf16> to vector<24x32xbf16>
    %c0_115 = arith.constant 0 : index
    %c146 = arith.constant 146 : index
    %119 = vector.load %arg12[%c0_115, %c146] : memref<32x640xbf16, #tpu.memory_space<vmem>>, vector<32x384xbf16>
    %cst_116 = arith.constant dense<0.000000e+00> : vector<24x384xf32>
    %120 = tpu.matmul %118, %119, %cst_116 {dimension_numbers = #tpu.dot_dimension_numbers<[1], [0], [0], [1], [0, 0, 1, 1], [], []>} : vector<24x32xbf16>, vector<32x384xbf16>, vector<24x384xf32> -> vector<24x384xf32>
    %121 = arith.addf %116, %120 : vector<24x384xf32>
    %c8 = arith.constant 8 : index
    %c0_117 = arith.constant 0 : index
    %c0_118 = arith.constant 0 : index
    %122 = vector.load %arg9[%c8, %c0_117, %c0_118] : memref<9x24x32xbf16, #tpu.memory_space<vmem>>, vector<1x24x32xbf16>
    %123 = vector.shape_cast %122 : vector<1x24x32xbf16> to vector<24x32xbf16>
    %c0_119 = arith.constant 0 : index
    %c147 = arith.constant 147 : index
    %124 = vector.load %arg12[%c0_119, %c147] : memref<32x640xbf16, #tpu.memory_space<vmem>>, vector<32x384xbf16>
    %cst_120 = arith.constant dense<0.000000e+00> : vector<24x384xf32>
    %125 = tpu.matmul %123, %124, %cst_120 {dimension_numbers = #tpu.dot_dimension_numbers<[1], [0], [0], [1], [0, 0, 1, 1], [], []>} : vector<24x32xbf16>, vector<32x384xbf16>, vector<24x384xf32> -> vector<24x384xf32>
    %126 = arith.addf %121, %125 : vector<24x384xf32>
    %c0_121 = arith.constant 0 : index
    %c0_122 = arith.constant 0 : index
    %c0_123 = arith.constant 0 : index
    %127 = vector.load %arg10[%c0_121, %c0_122, %c0_123] : memref<1x24x384xf32, #tpu.memory_space<vmem>>, vector<1x24x384xf32>
    %128 = vector.shape_cast %127 : vector<1x24x384xf32> to vector<24x384xf32>
    %129 = vector.shape_cast %126 : vector<24x384xf32> to vector<1x24x384xf32>
    tpu.vector_store %arg10[%c0_121, %c0_122, %c0_123], %129 {strides = array<i32>} : memref<1x24x384xf32, #tpu.memory_space<vmem>>, vector<1x24x384xf32>,
    return
  }
  func.func @transform_0(%arg0: i32) -> (i32, i32, i32) {
    %c0_i32 = arith.constant 0 : i32
    %c0_i32_0 = arith.constant 0 : i32
    %c0_i32_1 = arith.constant 0 : i32
    return %arg0, %c0_i32, %c0_i32_0 : i32, i32, i32
  }
  func.func @transform_1(%arg0: i32) -> (i32, i32, i32) {
    %c0_i32 = arith.constant 0 : i32
    %c0_i32_0 = arith.constant 0 : i32
    %c0_i32_1 = arith.constant 0 : i32
    return %arg0, %c0_i32, %c0_i32_0 : i32, i32, i32
  }
  func.func @transform_2(%arg0: i32) -> (i32, i32) {
    %c0_i32 = arith.constant 0 : i32
    %c0_i32_0 = arith.constant 0 : i32
    %c0_i32_1 = arith.constant 0 : i32
    return %c0_i32, %c0_i32_0 : i32, i32
  }
  func.func @transform_3(%arg0: i32) -> (i32, i32) {
    %c0_i32 = arith.constant 0 : i32
    %c0_i32_0 = arith.constant 0 : i32
    %c0_i32_1 = arith.constant 0 : i32
    return %c0_i32, %c0_i32_0 : i32, i32
  }
  func.func @transform_4(%arg0: i32) -> (i32, i32) {
    %c0_i32 = arith.constant 0 : i32
    %c0_i32_0 = arith.constant 0 : i32
    %c0_i32_1 = arith.constant 0 : i32
    return %c0_i32, %c0_i32_0 : i32, i32
  }
  func.func @transform_5(%arg0: i32) -> (i32, i32) {
    %c0_i32 = arith.constant 0 : i32
    %c0_i32_0 = arith.constant 0 : i32
    %c0_i32_1 = arith.constant 0 : i32
    return %c0_i32, %c0_i32_0 : i32, i32
  }
  func.func @transform_6(%arg0: i32) -> (i32, i32) {
    %c0_i32 = arith.constant 0 : i32
    %c0_i32_0 = arith.constant 0 : i32
    %c0_i32_1 = arith.constant 0 : i32
    return %c0_i32, %c0_i32_0 : i32, i32
  }
  func.func @transform_7(%arg0: i32) -> (i32, i32) {
    %c0_i32 = arith.constant 0 : i32
    %c0_i32_0 = arith.constant 0 : i32
    %c0_i32_1 = arith.constant 0 : i32
    return %c0_i32, %c0_i32_0 : i32, i32
  }
  func.func @transform_8(%arg0: i32) -> (i32, i32, i32) {
    %c0_i32 = arith.constant 0 : i32
    %c0_i32_0 = arith.constant 0 : i32
    %c0_i32_1 = arith.constant 0 : i32
    %c0_i32_2 = arith.constant 0 : i32
    return %c0_i32, %c0_i32_0, %c0_i32_1 : i32, i32, i32
  }
  func.func @transform_9(%arg0: i32) -> (i32, i32, i32) {
    %c0_i32 = arith.constant 0 : i32
    %c0_i32_0 = arith.constant 0 : i32
    %c0_i32_1 = arith.constant 0 : i32
    return %arg0, %c0_i32, %c0_i32_0 : i32, i32, i32
  }
}

</mosaic_0001>

<bundles_post_ra>
// kernel: upsample_forward.1
= control target key start
LH: loop header
LB: loop body
LE: loop exit
PB: predicated region body
PF: predicated region fallthrough
CT: control target
= control target key end

     0   :  { %s3035_s30 = smov 0   ;;  %s3451_s0 = inlined_call_operand.vmem [shape: bf16[2,32,64], index: 0, kind: input, shape index: {}]   ;;  %s3452_s1 = inlined_call_operand.vmem [shape: f32[2,16,256], index: 1, kind: input, shape index: {}]   ;;  %s3453_s2 = inlined_call_operand.vmem [shape: f32[16,1], index: 2, kind: input, shape index: {}]   ;;  %s3454_s3 = inlined_call_operand.vmem [shape: f32[16,1], index: 3, kind: input, shape index: {}]   ;;  %s3455_s4 = inlined_call_operand.vmem [shape: bf16[32,16], index: 4, kind: input, shape index: {}]   ;;  %s3456_s5 = inlined_call_operand.vmem [shape: bf16[64,384], index: 5, kind: input, shape index: {}]   ;;  %s3457_s6 = inlined_call_operand.vmem [shape: f32[32,1], index: 6, kind: input, shape index: {}]   ;;  %s3458_s7 = inlined_call_operand.vmem [shape: f32[1,384], index: 7, kind: input, shape index: {}]   ;;  %s3459_s8 = inlined_call_operand.vmem [shape: bf16[9,24,32], index: 8, kind: input, shape index: {}]   ;;  %s3460_s9 = inlined_call_operand.vmem [shape: f32[2,24,384], index: 9, kind: output, shape index: {}]  }
   0x1 LB: > { %s2500_s10 = sadd.s32 4294967295, %s2960_s30   ;;  %p2504_p0 = scmp.ge.s32.totalorder %s2960_s30, 1  ;;  %s2960_s30 = sphi %s3035_s30, %s19_s30  }
   0x2   : > { %p297_p1 = scmp.lt.s32.totalorder %s2960_s30, 3 }
   0x4   : > { %p298_p2 = pnand %p2504_p0, %p297_p1 }
   0x5   : > { %p338_p3 = scmp.lt.s32.totalorder (!%p298_p2), %s2500_s10, 1  ;;  %v2962_v0 = vmov (!%p298_p2), 0   ;;  %v2963_v1 = vmov (!%p298_p2), 0.0   ;;  %s2964_s15 = smov (!%p298_p2), 15   ;;  %v584_v6 = vld [vmem:[%s3453_s2] sm:$0xff] (!%p298_p2)  ;;  %v585_v7 = vld [vmem:[%s3453_s2 + $0x8] sm:$0xff] (!%p298_p2) }
   0x6   : > { %301 = sbr.rel (%p298_p2) target bundleno = 925 (0x39d), region = 56  ;;  %2890 = vset.pattern.permute.xlu1 (!%p298_p2), %v2962_v0  ;;  %2889 = vset.pattern.permute.xlu0 (!%p298_p2), %v2962_v0  ;;  %355 = vst [vmem:[#allocation2 + $0x8] sm:$0xff] (!%p298_p2), %v2963_v1  ;;  %354 = vst [vmem:[#allocation2] sm:$0xff] (!%p298_p2), %v2963_v1  ;;  %s2965_s16 = smov (!%p298_p2), 1   ;;  %v603_v8 = vld [vmem:[%s3454_s3 + $0x8] sm:$0xff] (!%p298_p2)  ;;  %v602_v9 = vld [vmem:[%s3454_s3] sm:$0xff] (!%p298_p2) }
   0x7   : > { %356 = vst [vmem:[#allocation2 + $0x10] sm:$0xff] (!%p298_p2), %v2963_v1  ;;  %357 = vst [vmem:[#allocation2 + $0x18] sm:$0xff] (!%p298_p2), %v2963_v1  ;;  %682 = vmatprep.mubr.bf16.mxu0 (!%p298_p2), %v2962_v0  ;;  %s2966_s17 = smov (!%p298_p2), 17   ;;  %s2967_s18 = smov (!%p298_p2), 3   ;;  %v956_v10 = vld [vmem:[%s3457_s6 + $0x8] sm:$0xff] (!%p298_p2)  ;;  %v955_v11 = vld [vmem:[%s3457_s6] sm:$0xff] (!%p298_p2) }
   0x8   : > { %358 = vst [vmem:[#allocation2 + $0x20] sm:$0xff] (!%p298_p2), %v2963_v1  ;;  %359 = vst [vmem:[#allocation2 + $0x28] sm:$0xff] (!%p298_p2), %v2963_v1  ;;  %s2968_s19 = smov (!%p298_p2), 19   ;;  %s2969_s20 = smov (!%p298_p2), 5   ;;  %v3079_v12 = vld [vmem:[%s3455_s4] sm:$0xff] (!%p298_p2)   ;;  %vm643_vm0 = vcmask (!%p298_p2), 130048  }
   0x9   : > { %s2970_s21 = smov (!%p298_p2), 21   ;;  %s2971_s22 = smov (!%p298_p2), 7   ;;  %v958_v13 = vld [vmem:[%s3457_s6 + $0x18] sm:$0xff] (!%p298_p2)  ;;  %v957_v14 = vld [vmem:[%s3457_s6 + $0x10] sm:$0xff] (!%p298_p2)  ;;  %2663 = vmatprep.mubr.msk.bf16.mxu1 (!%p298_p2), %vm643_vm0, %v3079_v12  ;;  %vm467_vm1 = vcmask (!%p298_p2), 121856   ;;  %vm374_vm2 = vcmask (!%p298_p2), 138248  }
   0xa   : > { %s2972_s23 = smov (!%p298_p2), 23   ;;  %s2973_s24 = smov (!%p298_p2), 9   ;;  %vm481_vm3 = vcmask (!%p298_p2), 269448   ;;  %vm387_vm4 = vcmask (!%p298_p2), 285848   ;;  %vm494_vm5 = vcmask (!%p298_p2), 417048   ;;  %vm400_vm6 = vcmask (!%p298_p2), 433448  }
   0xb   : > { %s2974_s25 = smov (!%p298_p2), 25   ;;  %s2975_s26 = smov (!%p298_p2), 11   ;;  %vm507_vm7 = vcmask (!%p298_p2), 564648   ;;  %vm413_vm8 = vcmask (!%p298_p2), 581048   ;;  %vm520_vm9 = vcmask (!%p298_p2), 712248   ;;  %vm426_vm10 = vcmask (!%p298_p2), 728648  }
   0xc   : > { %s2976_s27 = smov (!%p298_p2), 27   ;;  %s2977_s28 = smov (!%p298_p2), 13   ;;  %vm533_vm11 = vcmask (!%p298_p2), 859848   ;;  %vm439_vm12 = vcmask (!%p298_p2), 876248   ;;  %vm546_vm13 = vcmask (!%p298_p2), 1007448   ;;  %vm452_vm14 = vcmask (!%p298_p2), 1023848  }
   0xd   : > { %s3462_s10 = smov (!%p338_p3, %s2500_s10), 1  ;;  %s2978_s29 = smov 29   ;;  %vm465_vm15 = vcmask 1048568  }
   0xe   : > { %s2615_s11 = sshll.u32 %s3462_s10, 5  ;;  %s2980_s13 = smov 18  }
   0xf   : > { %s347_s14 = scalar_lea.vmem %s3452_s1, %s2615_s11 }
  0x10   : > { %v455_v2 = vld [vmem:[%s347_s14] sm:$0xff]  ;;  %v456_v3 = vld [vmem:[%s347_s14 + $0x10] sm:$0xff]  ;;  %v471_v4 = vld [vmem:[%s347_s14 + $0x8] sm:$0xff] }
  0x11   : > { %459 = vrot.lane.b32.xlu0 %v455_v2, %s2964_s15  ;;  %368 = vrot.lane.b32.xlu1 %v455_v2, %s2965_s16  ;;  %v472_v5 = vld [vmem:[%s347_s14 + $0x18] sm:$0xff]  ;;  %s2614_s14 = sshll.u32 %s3462_s10, 4 }
  0x15   : > { %461 = vrot.lane.b32.xlu0 %v456_v3, %s2964_s15  ;;  %370 = vrot.lane.b32.xlu1 %v456_v3, %s2965_s16  ;;  %s2981_s15 = smov 127  }
  0x19   : > { %475 = vrot.lane.b32.xlu0 %v471_v4, %s2966_s17  ;;  %477 = vrot.lane.b32.xlu1 %v472_v5, %s2966_s17 }
  0x1d   : > { %381 = vrot.lane.b32.xlu0 %v455_v2, %s2967_s18  ;;  %383 = vrot.lane.b32.xlu1 %v456_v3, %s2967_s18 }
  0x21   : > { %488 = vrot.lane.b32.xlu0 %v471_v4, %s2968_s19  ;;  %490 = vrot.lane.b32.xlu1 %v472_v5, %s2968_s19 }
  0x25   : > { %394 = vrot.lane.b32.xlu0 %v455_v2, %s2969_s20  ;;  %396 = vrot.lane.b32.xlu1 %v456_v3, %s2969_s20  ;;  %s3093_s20 = scalar_lea.vmem %s3451_s0, %s2614_s14 }
  0x29   : > { %501 = vrot.lane.b32.xlu0 %v471_v4, %s2970_s21  ;;  %503 = vrot.lane.b32.xlu1 %v472_v5, %s2970_s21 }
  0x2d   : > { %407 = vrot.lane.b32.xlu0 %v455_v2, %s2971_s22  ;;  %409 = vrot.lane.b32.xlu1 %v456_v3, %s2971_s22  ;;  %s2979_s22 = smov 31  }
  0x31   : > { %514 = vrot.lane.b32.xlu0 %v471_v4, %s2972_s23  ;;  %516 = vrot.lane.b32.xlu1 %v472_v5, %s2972_s23 }
  0x35   : > { %420 = vrot.lane.b32.xlu0 %v455_v2, %s2973_s24  ;;  %422 = vrot.lane.b32.xlu1 %v456_v3, %s2973_s24 }
  0x39   : > { %527 = vrot.lane.b32.xlu0 %v471_v4, %s2974_s25  ;;  %529 = vrot.lane.b32.xlu1 %v472_v5, %s2974_s25 }
  0x3d   : > { %433 = vrot.lane.b32.xlu0 %v455_v2, %s2975_s26  ;;  %435 = vrot.lane.b32.xlu1 %v456_v3, %s2975_s26 }
  0x41   : > { %540 = vrot.lane.b32.xlu0 %v471_v4, %s2976_s27  ;;  %542 = vrot.lane.b32.xlu1 %v472_v5, %s2976_s27 }
  0x45   : > { %446 = vrot.lane.b32.xlu0 %v455_v2, %s2977_s28  ;;  %448 = vrot.lane.b32.xlu1 %v456_v3, %s2977_s28 }
  0x49   : > { %553 = vrot.lane.b32.xlu0 %v471_v4, %s2978_s29  ;;  %555 = vrot.lane.b32.xlu1 %v472_v5, %s2978_s29 }
  0x4d   : > { %588 = vperm.xlu0 %2889, %v584_v6   ;;  %593 = vperm.xlu1 %2890, %v585_v7   ;;  %v2919_v6 = vld [vmem:[%s3456_s5 + $0x4] ss:$12 sps:$4 sm:$0xff]   ;;  %v2917_v7 = vld [vmem:[%s3456_s5] ss:$12 sps:$4 sm:$0xff]  }
  0x51   : > { %611 = vperm.xlu0 %2889, %v603_v8   ;;  %606 = vperm.xlu1 %2890, %v602_v9   ;;  %v2922_v8 = vld [vmem:[%s3456_s5 + $0x1c] ss:$12 sps:$4 sm:$0xff]   ;;  %v2920_v9 = vld [vmem:[%s3456_s5 + $0x18] ss:$12 sps:$4 sm:$0xff]  }
  0x55   : > { %571 = vrot.lane.b32.xlu0 %v472_v5, %s2979_s22  ;;  %569 = vrot.lane.b32.xlu1 %v471_v4, %s2979_s22 }
  0x59   : > { %966 = vperm.xlu0 %2889, %v956_v10   ;;  %961 = vperm.xlu1 %2890, %v955_v11  }
  0x5d   : > { %976 = vperm.xlu0 %2889, %v958_v13   ;;  %971 = vperm.xlu1 %2890, %v957_v14   ;;  %v2926_v13 = vld [vmem:[%s3456_s5 + $0x34] ss:$12 sps:$4 sm:$0xff]  }
  0x61   : > { %2897 = vrot.lane.b32.xlu0 %v2962_v0, %s2980_s13  ;;  %2892 = vrot.lane.b32.xlu1 %v2962_v0, %s2968_s19 }
  0x83   : > { %v3095_v15 = vpop.permute.xlu0 %459  ;;  %v369_v16 = vpop.permute.xlu1 %368 }
  0x84   : > { %468 = vst.msk [vmem:[#allocation2 + $0x8] sm:$0xff] %vm467_vm1, %v3095_v15 }
  0x85   : > { %375 = vst.msk [vmem:[#allocation2] sm:$0xff] %vm374_vm2, %v369_v16 }
  0x87   : > { %v3098_v17 = vpop.permute.xlu0 %461  ;;  %v371_v18 = vpop.permute.xlu1 %370 }
  0x88   : > { %470 = vst.msk [vmem:[#allocation2 + $0x20] sm:$0xff] %vm467_vm1, %v3098_v17  ;;  %vm559_vm1 = vcmask 1048552  }
  0x89   : > { %376 = vst.msk [vmem:[#allocation2 + $0x18] sm:$0xff] %vm374_vm2, %v371_v18  ;;  %vm561_vm2 = vcmask 105472   ;;  %v2924_v18 = vld [vmem:[%s3456_s5 + $0x30] ss:$12 sps:$4 sm:$0xff]  }
  0x8b   : > { %v476_v19 = vpop.permute.xlu0 %475  ;;  %v478_v20 = vpop.permute.xlu1 %477 }
  0x8c   : > { %482 = vst.msk [vmem:[#allocation2 + $0x8] sm:$0xff] %vm481_vm3, %v476_v19  ;;  %483 = vst.msk [vmem:[#allocation2 + $0x20] sm:$0xff] %vm481_vm3, %v478_v20  ;;  %vm575_vm3 = vcmask 253048  }
  0x8f   : > { %v382_v21 = vpop.permute.xlu0 %381  ;;  %v384_v22 = vpop.permute.xlu1 %383 }
  0x90   : > { %388 = vst.msk [vmem:[#allocation2] sm:$0xff] %vm387_vm4, %v382_v21  ;;  %389 = vst.msk [vmem:[#allocation2 + $0x18] sm:$0xff] %vm387_vm4, %v384_v22  ;;  %v2929_v21 = vld [vmem:[%s3456_s5 + $0x4c] ss:$12 sps:$4 sm:$0xff]   ;;  %vm846_vm4 = vcmask 523264  }
  0x93   : > { %v489_v23 = vpop.permute.xlu0 %488  ;;  %v491_v24 = vpop.permute.xlu1 %490 }
  0x94   : > { %495 = vst.msk [vmem:[#allocation2 + $0x8] sm:$0xff] %vm494_vm5, %v489_v23  ;;  %496 = vst.msk [vmem:[#allocation2 + $0x20] sm:$0xff] %vm494_vm5, %v491_v24  ;;  %v2927_v23 = vld [vmem:[%s3456_s5 + $0x48] ss:$12 sps:$4 sm:$0xff]   ;;  %vm1234_vm5 = vcmask 154624  }
  0x95   : > { %v2931_v24 = vld [vmem:[%s3456_s5 + $0x8] ss:$12 sps:$4 sm:$0xff]  }
  0x97   : > { %v395_v25 = vpop.permute.xlu0 %394  ;;  %v397_v26 = vpop.permute.xlu1 %396 }
  0x98   : > { %401 = vst.msk [vmem:[#allocation2] sm:$0xff] %vm400_vm6, %v395_v25  ;;  %402 = vst.msk [vmem:[#allocation2 + $0x18] sm:$0xff] %vm400_vm6, %v397_v26  ;;  %v2930_v25 = vld [vmem:[%s3093_s20] sm:$0xff]   ;;  %vm1104_vm6 = vcmask 261120  }
  0x99   : > { %v2932_v26 = vld [vmem:[%s3456_s5 + $0x20] ss:$12 sps:$4 sm:$0xff]  }
  0x9b   : > { %v502_v27 = vpop.permute.xlu0 %501  ;;  %v504_v28 = vpop.permute.xlu1 %503 }
  0x9c   : > { %508 = vst.msk [vmem:[#allocation2 + $0x8] sm:$0xff] %vm507_vm7, %v502_v27  ;;  %509 = vst.msk [vmem:[#allocation2 + $0x20] sm:$0xff] %vm507_vm7, %v504_v28  ;;  %v2934_v27 = vld [vmem:[%s3456_s5 + $0x38] ss:$12 sps:$4 sm:$0xff]   ;;  %v2933_v28 = vld [vmem:[%s3093_s20 + $0x8] sm:$0xff]   ;;  %vm1380_vm7 = vcmask 138240  }
  0x9f   : > { %v408_v29 = vpop.permute.xlu0 %407  ;;  %v410_v30 = vpop.permute.xlu1 %409 }
  0xa0   : > { %414 = vst.msk [vmem:[#allocation2] sm:$0xff] %vm413_vm8, %v408_v29  ;;  %415 = vst.msk [vmem:[#allocation2 + $0x18] sm:$0xff] %vm413_vm8, %v410_v30  ;;  %v2935_v29 = vld [vmem:[%s3456_s5 + $0x50] ss:$12 sps:$4 sm:$0xff]   ;;  %v1005_v30 = vlaneseq  ;;  %vm1535_vm8 = vcmask 7168  }
  0xa3   : > { %v515_v31 = vpop.permute.xlu0 %514  ;;  %v517_v32 = vpop.permute.xlu1 %516 }
  0xa4   : > { %521 = vst.msk [vmem:[#allocation2 + $0x8] sm:$0xff] %vm520_vm9, %v515_v31  ;;  %522 = vst.msk [vmem:[#allocation2 + $0x20] sm:$0xff] %vm520_vm9, %v517_v32  ;;  %v3161_v31 = vshrl.u32 %v1005_v30, 7  ;;  %vm1832_vm9 = vcmask 1039360  }
  0xa7   : > { %v421_v33 = vpop.permute.xlu0 %420  ;;  %v423_v34 = vpop.permute.xlu1 %422 }
  0xa8   : > { %427 = vst.msk [vmem:[#allocation2] sm:$0xff] %vm426_vm10, %v421_v33  ;;  %428 = vst.msk [vmem:[#allocation2 + $0x18] sm:$0xff] %vm426_vm10, %v423_v34  ;;  %v1007_v34 = vsub.s32 0, %v3161_v31  ;;  %vm1987_vm10 = vcmask 908288  }
  0xab   : > { %v528_v35 = vpop.permute.xlu0 %527  ;;  %v530_v36 = vpop.permute.xlu1 %529 }
  0xac   : > { %534 = vst.msk [vmem:[#allocation2 + $0x8] sm:$0xff] %vm533_vm11, %v528_v35  ;;  %535 = vst.msk [vmem:[#allocation2 + $0x20] sm:$0xff] %vm533_vm11, %v530_v36  ;;  %vm2142_vm11 = vcmask 900096  }
  0xaf   : > { %v434_v37 = vpop.permute.xlu0 %433  ;;  %v436_v38 = vpop.permute.xlu1 %435 }
  0xb0   : > { %440 = vst.msk [vmem:[#allocation2] sm:$0xff] %vm439_vm12, %v434_v37  ;;  %441 = vst.msk [vmem:[#allocation2 + $0x18] sm:$0xff] %vm439_vm12, %v436_v38  ;;  %v1003_v37 = vld [vmem:[%s3458_s7] sm:$0x7]  ;;  %v1011_v38 = vsub.s32 1, %v3161_v31  ;;  %vm2297_vm12 = vcmask 891904  }
  0xb3   : > { %v541_v39 = vpop.permute.xlu0 %540  ;;  %v543_v40 = vpop.permute.xlu1 %542 }
  0xb4   : > { %547 = vst.msk [vmem:[#allocation2 + $0x8] sm:$0xff] %vm546_vm13, %v541_v39  ;;  %548 = vst.msk [vmem:[#allocation2 + $0x20] sm:$0xff] %vm546_vm13, %v543_v40 }
  0xb7   : > { %v447_v41 = vpop.permute.xlu0 %446  ;;  %v449_v42 = vpop.permute.xlu1 %448 }
  0xb8   : > { %453 = vst.msk [vmem:[#allocation2] sm:$0xff] %vm452_vm14, %v447_v41  ;;  %454 = vst.msk [vmem:[#allocation2 + $0x18] sm:$0xff] %vm452_vm14, %v449_v42 }
  0xb9   : > { %466 = vst.msk [vmem:[#allocation2] sm:$0xff] %vm465_vm15, %v3095_v15  ;;  %469 = vst.msk [vmem:[#allocation2 + $0x18] sm:$0xff] %vm465_vm15, %v3098_v17 }
  0xbb   : > { %v554_v43 = vpop.permute.xlu0 %553  ;;  %v556_v44 = vpop.permute.xlu1 %555 }
  0xbc   : > { %560 = vst.msk [vmem:[#allocation2 + $0x8] sm:$0xff] %vm559_vm1, %v554_v43  ;;  %563 = vst.msk [vmem:[#allocation2 + $0x20] sm:$0xff] %vm559_vm1, %v556_v44 }
  0xbd   : > { %562 = vst.msk [vmem:[#allocation2 + $0x10] sm:$0xff] %vm561_vm2, %v554_v43  ;;  %564 = vst.msk [vmem:[#allocation2 + $0x28] sm:$0xff] %vm561_vm2, %v556_v44 }
  0xc0   : > { %v578_v47 = vld [vmem:[#allocation2] sm:$0xff]  ;;  %v581_v49 = vld [vmem:[#allocation2 + $0x18] sm:$0xff] }
  0xc3   : > { %v579_v48 = vld [vmem:[#allocation2 + $0x8] sm:$0xff]  ;;  %v582_v50 = vld [vmem:[#allocation2 + $0x20] sm:$0xff] }
  0xcc   : > { %v589_v45 = vpop.permute.xlu0 %588  ;;  %v594_v46 = vpop.permute.xlu1 %593 }
  0xcd   : > { %v596_v51 = vmul.f32 %v589_v45, %v578_v47  ;;  %v597_v52 = vmul.f32 %v589_v45, %v579_v48  ;;  %v599_v53 = vmul.f32 %v594_v46, %v581_v49  ;;  %v600_v54 = vmul.f32 %v594_v46, %v582_v50 }
  0xce   : > { %v1008_v47 = vrot.slane %v1003_v37, %v1007_v34 }
  0xd0   : > { %v612_v55 = vpop.permute.xlu0 %611  ;;  %v607_v56 = vpop.permute.xlu1 %606 }
  0xd1   : > { %v617_v57 = vadd.f32 %v612_v55, %v599_v53  ;;  %v614_v58 = vadd.f32 %v607_v56, %v596_v51  ;;  %v615_v59 = vadd.f32 %v607_v56, %v597_v52  ;;  %v618_v60 = vadd.f32 %v612_v55, %v600_v54 }
  0xd2   : > { %v1012_v51 = vrot.slane %v1003_v37, %v1011_v38 }
  0xd3   : > { %v621_v61 = vmax.f32 %v615_v59, 0.0  ;;  %v624_v62 = vmax.f32 %v618_v60, 0.0  ;;  %v620_v63 = vmax.f32 %v614_v58, 0.0  ;;  %v623_v1 = vmax.f32 %v617_v57, 0.0 }
  0xd4   : > { %v572_v2 = vpop.permute.xlu0 %571  ;;  %v570_v3 = vpop.permute.xlu1 %569 }
  0xd5   : > { %577 = vst.msk [vmem:[#allocation2 + $0x28] sm:$0xff] %vm575_vm3, %v572_v2  ;;  %576 = vst.msk [vmem:[#allocation2 + $0x10] sm:$0xff] %vm575_vm3, %v570_v3  ;;  %v631_v4 = vpack.c.bf16 %v624_v62, %v621_v61  ;;  %v630_v5 = vpack.c.bf16 %v623_v1, %v620_v63 }
  0xd7   : > { %650 = vmatprep.subr.bf16.mxu0 %v631_v4 }
  0xd8   : > { %651 = vmatpush1.bf16.msra.mxu0 %v630_v5  ;;  %v962_v33 = vpop.permute.xlu1 %961  ;;  %v967_v43 = vpop.permute.xlu0 %966 }
  0xd9   : > { %853 = vmatprep.subr.bf16.mxu0 %v2919_v6 }
  0xdb   : > { %2512 = vmatmul.mubr.msk.bf16.vlgmr.msra.gmra.mrb[0].mxu0 %vm643_vm0, %v3079_v12  ;;  %v2923_v12 = vld [vmem:[%s3455_s4 + $0x8] sm:$0xff]  }
  0xdc   : > { %854 = vmatpush1.bf16.msra.mxu0 %v2917_v7  ;;  %692 = vmatprep.mubr.bf16.mxu0 %v2962_v0  ;;  %v580_v10 = vld [vmem:[#allocation2 + $0x10] sm:$0xff]  ;;  %v583_v11 = vld [vmem:[#allocation2 + $0x28] sm:$0xff]  ;;  %v972_v57 = vpop.permute.xlu1 %971  ;;  %v977_v1 = vpop.permute.xlu0 %976 }
  0xdd   : > { %855 = vmatprep.subr.bf16.mxu0 %v2922_v8  ;;  %v598_v14 = vmul.f32 %v589_v45, %v580_v10  ;;  %v601_v15 = vmul.f32 %v594_v46, %v583_v11 }
  0xdf   : > { %v616_v16 = vadd.f32 %v607_v56, %v598_v14  ;;  %v619_v17 = vadd.f32 %v612_v55, %v601_v15 }
  0xe0   : > { %856 = vmatpush1.bf16.msra.mxu0 %v2920_v9 }
  0xe1   : > { %857 = vmatprep.subr.bf16.mxu0 %v2926_v13  ;;  %v622_v19 = vmax.f32 %v616_v16, 0.0  ;;  %v625_v20 = vmax.f32 %v619_v17, 0.0 }
  0xe3   : > { %2513 = vmatmul.mubr.msk.bf16.gmra.mrb[4].mxu0 %vm643_vm0, %v2923_v12  ;;  %v632_v22 = vpack.c.bf16 %v625_v20, %v622_v19  ;;  %v1015_v19 = vsub.s32 2, %v3161_v31 }
  0xe4   : > { %858 = vmatpush1.bf16.msra.mxu0 %v2924_v18  ;;  %885 = vmatprep.mubr.bf16.mxu0 %v2962_v0 }
  0xe5   : > { %2661 = vmatprep.subr.bf16.mxu1 %v632_v22  ;;  %859 = vmatprep.subr.bf16.mxu0 %v2929_v21  ;;  %v1016_v30 = vrot.slane %v1003_v37, %v1015_v19  ;;  %v2940_v19 = vld [vmem:[%s3459_s8 + $0x18] sm:$0xff]  }
  0xe6   : > { %2662 = vmatpush3.bf16.msra.mxu1 %v632_v22 }
  0xe8   : > { %860 = vmatpush1.bf16.msra.mxu0 %v2927_v23 }
  0xe9   : > { %2667 = vmatprep.subr.bf16.mxu0 %v2931_v24  ;;  %2664 = vmatmul.mubr.msk.bf16.vlgmr.msra.gmra.mrb[0].mxu1 %vm643_vm0, %v2923_v12  ;;  %vm1091_vm0 = vcmask 146432  }
  0xea   : > { %1285 = vmatprep.mubr.bf16.mxu1 %v2962_v0 }
  0xeb   : > { %2530 = vmatmul.mubr.msk.bf16.vlgmr.msra.gmra.mrb[0].mxu0 %vm846_vm4, %v2930_v25 }
  0xec   : > { %2668 = vmatpush3.bf16.msra.mxu0 %v2931_v24  ;;  %895 = vmatprep.mubr.bf16.mxu0 %v2962_v0 }
  0xed   : > { %2669 = vmatprep.subr.bf16.mxu0 %v2932_v26 }
  0xf0   : > { %2670 = vmatpush3.bf16.msra.mxu0 %v2932_v26 }
  0xf1   : > { %2671 = vmatprep.subr.bf16.mxu0 %v2934_v27 }
  0xf3   : > { %2531 = vmatmul.mubr.msk.bf16.gmra.mrb[4].mxu0 %vm846_vm4, %v2933_v28 }
  0xf4   : > { %2672 = vmatpush3.bf16.msra.mxu0 %v2934_v27  ;;  %2675 = vmatprep.mubr.msk.bf16.mxu0 %vm846_vm4, %v2930_v25 }
  0xf5   : > { %2673 = vmatprep.subr.bf16.mxu0 %v2935_v29 }
  0xf8   : > { %2674 = vmatpush3.bf16.msra.mxu0 %v2935_v29 }
  0xfb   : > { %2676 = vmatmul.mubr.msk.bf16.vlgmr.msra.gmra.mrb[8].mxu0 %vm846_vm4, %v2933_v28 }
  0xfc   : > { %1143 = vmatprep.mubr.bf16.mxu0 %v2962_v0 }
 0x1bc   : > { %v2665_v32 = vpop.f32.mrb[0].mxu1 }
 0x1bd   : > { %v737_v35 = vpop.f32.mrb[1].mxu1 }
 0x1be   : > { %v887_v36 = vpop.f32.mrb[0].mxu0  ;;  %v2666_v39 = vpop.f32.mrb[2].mxu1 }
 0x1bf   : > { %v979_v40 = vadd.f32 %v962_v33, %v887_v36  ;;  %v889_v41 = vpop.f32.mrb[1].mxu0  ;;  %v740_v42 = vpop.f32.mrb[3].mxu1 }
 0x1c0   : > { %v980_v44 = vadd.f32 %v962_v33, %v889_v41  ;;  %v891_v45 = vpop.f32.mrb[2].mxu0 }
 0x1c1   : > { %v991_v46 = vmax.f32 %v979_v40, 0.0  ;;  %v982_v48 = vadd.f32 %v967_v43, %v891_v45  ;;  %v893_v49 = vpop.f32.mrb[3].mxu0 }
 0x1c2   : > { %v992_v50 = vmax.f32 %v980_v44, 0.0  ;;  %v983_v52 = vadd.f32 %v967_v43, %v893_v49 }
 0x1c3   : > { %v994_v53 = vmax.f32 %v982_v48, 0.0  ;;  %v1020_v55 = vmul.f32 %v1008_v47, %v991_v46 }
 0x1c4   : > { %v995_v54 = vmax.f32 %v983_v52, 0.0  ;;  %v1021_v58 = vmul.f32 %v1012_v51, %v992_v50 }
 0x1c5   : > { %v1023_v56 = vmul.f32 %v1008_v47, %v994_v53 }
 0x1c6   : > { %v1024_v59 = vmul.f32 %v1012_v51, %v995_v54  ;;  %v897_v60 = vpop.f32.mrb[4].mxu0 }
 0x1c7   : > { %v3168_v61 = vpack.c.bf16 %v1023_v56, %v1020_v55  ;;  %v985_v62 = vadd.f32 %v972_v57, %v897_v60  ;;  %v899_v63 = vpop.f32.mrb[5].mxu0 }
 0x1c8   : > { %v3170_v2 = vpack.c.bf16 %v1024_v59, %v1021_v58  ;;  %v986_v3 = vadd.f32 %v972_v57, %v899_v63  ;;  %v901_v4 = vpop.f32.mrb[6].mxu0  ;;  %v2936_v59 = vld [vmem:[%s3459_s8] sm:$0xff]  }
 0x1c9   : > { %v997_v5 = vmax.f32 %v985_v62, 0.0  ;;  %v988_v6 = vadd.f32 %v977_v1, %v901_v4  ;;  %1077 = vrot.lane.b32.xlu0 %v3168_v61, %s2980_s13  ;;  %1220 = vrot.lane.b32.xlu1 %v3168_v61, %s2968_s19  ;;  %v903_v7 = vpop.f32.mrb[7].mxu0 }
 0x1ca   : > { %v998_v8 = vmax.f32 %v986_v3, 0.0  ;;  %v989_v9 = vadd.f32 %v977_v1, %v903_v7  ;;  %v2937_v7 = vld [vmem:[%s3459_s8 + $0xc] sm:$0xff]  }
 0x1cb   : > { %v1000_v10 = vmax.f32 %v988_v6, 0.0  ;;  %v1026_v13 = vmul.f32 %v1008_v47, %v997_v5 }
 0x1cc   : > { %v1001_v11 = vmax.f32 %v989_v9, 0.0  ;;  %v1027_v15 = vmul.f32 %v1012_v51, %v998_v8  ;;  %v3295_v9 = vld [vmem:[%s3459_s8 + $0x8] ss:$0 sps:$4 sm:$0xff]  }
 0x1cd   : > { %v1029_v14 = vmul.f32 %v1008_v47, %v1000_v10  ;;  %1079 = vrot.lane.b32.xlu1 %v3170_v2, %s2980_s13  ;;  %1222 = vrot.lane.b32.xlu0 %v3170_v2, %s2968_s19 }
 0x1ce   : > { %v1030_v12 = vmul.f32 %v1012_v51, %v1001_v11  ;;  %v2677_v16 = vpop.f32.mrb[8].mxu0 }
 0x1cf   : > { %v3180_v17 = vpack.c.bf16 %v1029_v14, %v1026_v13  ;;  %v949_v18 = vadd.f32 %v2677_v16, %v2665_v32  ;;  %v940_v20 = vpop.f32.mrb[9].mxu0 }
 0x1d0   : > { %v3183_v21 = vpack.c.bf16 %v1030_v12, %v1027_v15  ;;  %v941_v22 = vadd.f32 %v940_v20, %v737_v35  ;;  %v2678_v23 = vpop.f32.mrb[10].mxu0  ;;  %v2939_v12 = vld [vmem:[%s3459_s8 + $0x14] ss:$0 sps:$4 sm:$0xff]  }
 0x1d1   : > { %v987_v24 = vadd.f32 %v972_v57, %v949_v18  ;;  %v952_v25 = vadd.f32 %v2678_v23, %v2666_v39  ;;  %1228 = vrot.lane.b32.xlu0 %v3180_v17, %s2968_s19  ;;  %v943_v26 = vpop.f32.mrb[11].mxu0 }
 0x1d2   : > { %v981_v27 = vadd.f32 %v962_v33, %v941_v22  ;;  %v944_v28 = vadd.f32 %v943_v26, %v740_v42  ;;  %1230 = vrot.lane.b32.xlu1 %v3183_v21, %s2968_s19  ;;  %v2898_v42 = vpop.permute.xlu0 %2897 }
 0x1d3   : > { %v999_v29 = vmax.f32 %v987_v24, 0.0  ;;  %v990_v32 = vadd.f32 %v977_v1, %v952_v25  ;;  %v2899_v46 = vunpack.i.l.bf16 %v2898_v42  ;;  %v2900_v63 = vunpack.i.h.bf16 %v2898_v42 }
 0x1d4   : > { %v993_v31 = vmax.f32 %v981_v27, 0.0  ;;  %v984_v34 = vadd.f32 %v967_v43, %v944_v28  ;;  %v2893_v43 = vpop.permute.xlu1 %2892  ;;  %v2941_v28 = vld [vmem:[%s3459_s8 + $0x20] ss:$0 sps:$4 sm:$0xff]  }
 0x1d5   : > { %v1002_v36 = vmax.f32 %v990_v32, 0.0  ;;  %1368 = vrot.lane.b32.xlu0 %v3170_v2, %s2966_s17  ;;  %v1028_v38 = vmul.f32 %v1016_v30, %v999_v29  ;;  %v2894_v47 = vunpack.i.l.bf16 %v2893_v43  ;;  %v2895_v55 = vunpack.i.h.bf16 %v2893_v43 }
 0x1d6   : > { %v996_v35 = vmax.f32 %v984_v34, 0.0  ;;  %1085 = vrot.lane.b32.xlu1 %v3180_v17, %s2980_s13  ;;  %v1022_v33 = vmul.f32 %v1016_v30, %v993_v31 }
 0x1d7   : > { %v1031_v39 = vmul.f32 %v1016_v30, %v1002_v36 }
 0x1d8   : > { %v1025_v40 = vmul.f32 %v1016_v30, %v996_v35 }
 0x1d9   : > { %v3193_v41 = vpack.c.bf16 %v1031_v39, %v1028_v38  ;;  %1087 = vrot.lane.b32.xlu0 %v3183_v21, %s2980_s13 }
 0x1da   : > { %v3197_v37 = vpack.c.bf16 %v1025_v40, %v1022_v33  ;;  %1366 = vrot.lane.b32.xlu1 %v3168_v61, %s2966_s17  ;;  %v2942_v40 = vld [vmem:[%s3459_s8 + $0x24] sm:$0xff]  }
 0x1dd   : > { %1374 = vrot.lane.b32.xlu0 %v3180_v17, %s2966_s17 }
 0x1de   : > { %1364 = vrot.lane.b32.xlu1 %v2962_v0, %s2966_s17 }
 0x1e1   : > { %1372 = vrot.lane.b32.xlu0 %v2962_v0, %s2966_s17 }
 0x1e2   : > { %1376 = vrot.lane.b32.xlu1 %v3183_v21, %s2966_s17 }
 0x1e5   : > { %1089 = vrot.lane.b32.xlu0 %v3193_v41, %s2980_s13 }
 0x1e6   : > { %1081 = vrot.lane.b32.xlu1 %v3197_v37, %s2980_s13 }
 0x1e9   : > { %1523 = vrot.lane.b32.xlu0 %v3170_v2, %s2965_s16 }
 0x1ea   : > { %1521 = vrot.lane.b32.xlu1 %v3168_v61, %s2965_s16 }
 0x1ed   : > { %1531 = vrot.lane.b32.xlu0 %v3183_v21, %s2965_s16 }
 0x1ee   : > { %1519 = vrot.lane.b32.xlu1 %v2962_v0, %s2965_s16 }
 0x1f1   : > { %1224 = vrot.lane.b32.xlu0 %v3197_v37, %s2968_s19 }
 0x1f2   : > { %1529 = vrot.lane.b32.xlu1 %v3180_v17, %s2965_s16 }
 0x1f5   : > { %1232 = vrot.lane.b32.xlu0 %v3193_v41, %s2968_s19  ;;  %s2984_s19 = smov 109  }
 0x1f6   : > { %1527 = vrot.lane.b32.xlu1 %v2962_v0, %s2965_s16 }
 0x1f9   : > { %1378 = vrot.lane.b32.xlu0 %v3193_v41, %s2966_s17 }
 0x1fa   : > { %1370 = vrot.lane.b32.xlu1 %v3197_v37, %s2966_s17  ;;  %s2982_s17 = smov 111  }
 0x1fd   : > { %1533 = vrot.lane.b32.xlu0 %v3193_v41, %s2965_s16 }
 0x1fe   : > { %1818 = vrot.lane.b32.xlu1 %v3170_v2, %s2981_s15 }
 0x201   : > { %1820 = vrot.lane.b32.xlu0 %v3197_v37, %s2981_s15 }
 0x202   : > { %1525 = vrot.lane.b32.xlu1 %v3197_v37, %s2965_s16  ;;  %s2983_s16 = smov 110  }
 0x205   : > { %1826 = vrot.lane.b32.xlu0 %v3183_v21, %s2981_s15 }
 0x206   : > { %1816 = vrot.lane.b32.xlu1 %v3168_v61, %s2981_s15 }
 0x209   : > { %1824 = vrot.lane.b32.xlu0 %v3180_v17, %s2981_s15 }
 0x20a   : > { %1828 = vrot.lane.b32.xlu1 %v3193_v41, %s2981_s15 }
 0x20d   : > { %2902 = vrot.lane.b32.xlu0 %v2962_v0, %s2981_s15 }
 0x20e   : > { %1973 = vrot.lane.b32.xlu1 %v3170_v2, %s2982_s17 }
 0x211   : > { %1975 = vrot.lane.b32.xlu0 %v3197_v37, %s2982_s17 }
 0x212   : > { %1971 = vrot.lane.b32.xlu1 %v3168_v61, %s2982_s17 }
 0x215   : > { %1983 = vrot.lane.b32.xlu0 %v3193_v41, %s2982_s17 }
 0x216   : > { %1981 = vrot.lane.b32.xlu1 %v3183_v21, %s2982_s17 }
 0x219   : > { %2907 = vrot.lane.b32.xlu0 %v2962_v0, %s2982_s17 }
 0x21a   : > { %1979 = vrot.lane.b32.xlu1 %v3180_v17, %s2982_s17 }
 0x21d   : > { %2130 = vrot.lane.b32.xlu0 %v3197_v37, %s2983_s16 }
 0x21e   : > { %2128 = vrot.lane.b32.xlu1 %v3170_v2, %s2983_s16 }
 0x221   : > { %2136 = vrot.lane.b32.xlu0 %v3183_v21, %s2983_s16 }
 0x222   : > { %2126 = vrot.lane.b32.xlu1 %v3168_v61, %s2983_s16 }
 0x225   : > { %2134 = vrot.lane.b32.xlu0 %v3180_v17, %s2983_s16 }
 0x226   : > { %2138 = vrot.lane.b32.xlu1 %v3193_v41, %s2983_s16 }
 0x229   : > { %2283 = vrot.lane.b32.xlu0 %v3170_v2, %s2984_s19 }
 0x22a   : > { %2912 = vrot.lane.b32.xlu1 %v2962_v0, %s2983_s16  ;;  %s2857_s16 = smul.u32 72, %s3462_s10 }
 0x22c   : > { %s352_s21 = scalar_lea.vmem %s3460_s9, %s2857_s16 }
 0x22d   : > { %2281 = vrot.lane.b32.xlu0 %v3168_v61, %s2984_s19 }
 0x22e   : > { %2285 = vrot.lane.b32.xlu1 %v3197_v37, %s2984_s19 }
 0x231   : > { %2293 = vrot.lane.b32.xlu0 %v3193_v41, %s2984_s19 }
 0x232   : > { %2291 = vrot.lane.b32.xlu1 %v3183_v21, %s2984_s19 }
 0x235   : > { %2287 = vrot.lane.b32.xlu0 %v2962_v0, %s2984_s19 }
 0x236   : > { %2289 = vrot.lane.b32.xlu1 %v3180_v17, %s2984_s19 }
 0x23a   : > { %2295 = vrot.lane.b32.xlu1 %v2962_v0, %s2984_s19 }
 0x23b   : > { %v1078_v44 = vpop.permute.xlu0 %1077  ;;  %v1221_v45 = vpop.permute.xlu1 %1220 }
 0x23c   : > { %v1092_v52 = vsel %vm1091_vm0, %v2899_v46, %v1078_v44  ;;  %v1235_v53 = vsel %vm1234_vm5, %v2894_v47, %v1221_v45  ;;  %v2943_v47 = vld [vmem:[%s3459_s8 + $0x2c] ss:$0 sps:$4 sm:$0xff]  }
 0x23f   : > { %v1080_v48 = vpop.permute.xlu1 %1079  ;;  %v3266_v49 = vpop.permute.xlu0 %1222 }
 0x240   : > { %v1093_v50 = vsel %vm1091_vm0, %v1078_v44, %v1080_v48  ;;  %v1236_v51 = vsel %vm1234_vm5, %v1221_v45, %v3266_v49 }
 0x241   : > { %1111 = vmatprep.subr.bf16.mxu0 %v1093_v50  ;;  %1253 = vmatprep.subr.bf16.mxu1 %v1236_v51 }
 0x242   : > { %1112 = vmatpush1.bf16.msra.mxu0 %v1092_v52  ;;  %1254 = vmatpush1.bf16.msra.mxu1 %v1235_v53  ;;  %v2944_v52 = vld [vmem:[%s3459_s8 + $0x30] sm:$0xff]  }
 0x243   : > { %v1229_v54 = vpop.permute.xlu0 %1228 }
 0x244   : > { %v3273_v56 = vpop.permute.xlu1 %1230  ;;  %v1238_v58 = vsel %vm1234_vm5, %v2895_v55, %v1229_v54 }
 0x245   : > { %v1239_v57 = vsel %vm1234_vm5, %v1229_v54, %v3273_v56 }
 0x246   : > { %1255 = vmatprep.subr.bf16.mxu1 %v1239_v57 }
 0x247   : > { %v3281_v60 = vpop.permute.xlu0 %1368  ;;  %1256 = vmatpush1.bf16.msra.mxu1 %v1238_v58 }
 0x248   : > { %v1086_v62 = vpop.permute.xlu1 %1085 }
 0x249   : > { %v1095_v5 = vsel %vm1091_vm0, %v2900_v63, %v1086_v62 }
 0x24a   : > { %2545 = vmatmul.mubr.msk.bf16.vlgmr.msra.gmra.mrb[4].mxu1 %vm1104_vm6, %v2936_v59 }
 0x24b   : > { %v1088_v1 = vpop.permute.xlu0 %1087  ;;  %1295 = vmatprep.mubr.bf16.mxu1 %v2962_v0 }
 0x24c   : > { %v1367_v3 = vpop.permute.xlu1 %1366  ;;  %v1096_v4 = vsel %vm1091_vm0, %v1086_v62, %v1088_v1 }
 0x24d   : > { %1113 = vmatprep.subr.bf16.mxu0 %v1096_v4  ;;  %v1382_v6 = vsel %vm1380_vm7, %v1367_v3, %v3281_v60 }
 0x24e   : > { %1114 = vmatpush1.bf16.msra.mxu0 %v1095_v5  ;;  %1399 = vmatprep.subr.bf16.mxu1 %v1382_v6  ;;  %v2946_v6 = vld [vmem:[%s3459_s8 + $0x3c] sm:$0xff]  }
 0x24f   : > { %v1375_v8 = vpop.permute.xlu0 %1374 }
 0x250   : > { %v1365_v10 = vpop.permute.xlu1 %1364 }
 0x251   : > { %v1381_v11 = vsel %vm1380_vm7, %v1365_v10, %v1367_v3  ;;  %2539 = vmatmul.mubr.msk.bf16.vlgmr.msra.gmra.mrb[12].mxu0 %vm1104_vm6, %v2937_v7 }
 0x252   : > { %1400 = vmatpush1.bf16.msra.mxu1 %v1381_v11  ;;  %1153 = vmatprep.mubr.bf16.mxu0 %v2962_v0 }
 0x253   : > { %v1373_v13 = vpop.permute.xlu0 %1372  ;;  %2546 = vmatmul.mubr.msk.bf16.gmra.mrb[8].mxu1 %vm1104_vm6, %v3295_v9 }
 0x254   : > { %v1377_v14 = vpop.permute.xlu1 %1376  ;;  %1431 = vmatprep.mubr.bf16.mxu1 %v2962_v0  ;;  %v1384_v16 = vsel %vm1380_vm7, %v1373_v13, %v1375_v8 }
 0x255   : > { %v1385_v15 = vsel %vm1380_vm7, %v1375_v8, %v1377_v14 }
 0x256   : > { %1401 = vmatprep.subr.bf16.mxu1 %v1385_v15 }
 0x257   : > { %1402 = vmatpush1.bf16.msra.mxu1 %v1384_v16  ;;  %v1090_v18 = vpop.permute.xlu0 %1089 }
 0x258   : > { %v1082_v20 = vpop.permute.xlu1 %1081  ;;  %v1097_v24 = vsel %vm1091_vm0, %v1088_v1, %v1090_v18 }
 0x259   : > { %2540 = vmatmul.mubr.msk.bf16.gmra.mrb[16].mxu0 %vm1104_vm6, %v2939_v12  ;;  %v1094_v22 = vsel %vm1091_vm0, %v1080_v48, %v1082_v20 }
 0x25a   : > { %2679 = vmatprep.subr.bf16.mxu0 %v1094_v22  ;;  %2683 = vmatprep.mubr.msk.bf16.mxu0 %vm1104_vm6, %v2937_v7 }
 0x25b   : > { %v1524_v23 = vpop.permute.xlu0 %1523  ;;  %2680 = vmatpush3.bf16.msra.mxu0 %v1094_v22  ;;  %2554 = vmatmul.mubr.msk.bf16.vlgmr.msra.gmra.mrb[4].mxu1 %vm1104_vm6, %v2940_v19 }
 0x25c   : > { %2681 = vmatprep.subr.bf16.mxu0 %v1097_v24  ;;  %v1522_v25 = vpop.permute.xlu1 %1521  ;;  %1441 = vmatprep.mubr.bf16.mxu1 %v2962_v0 }
 0x25d   : > { %v1537_v26 = vsel %vm1535_vm8, %v1522_v25, %v1524_v23 }
 0x25e   : > { %1554 = vmatprep.subr.bf16.mxu1 %v1537_v26 }
 0x25f   : > { %v1532_v27 = vpop.permute.xlu0 %1531  ;;  %2682 = vmatpush3.bf16.msra.mxu0 %v1097_v24 }
 0x260   : > { %v1520_v29 = vpop.permute.xlu1 %1519 }
 0x261   : > { %v1536_v30 = vsel %vm1535_vm8, %v1520_v29, %v1522_v25  ;;  %v2948_v25 = vld [vmem:[%s3459_s8 + $0x48] sm:$0xff]  }
 0x262   : > { %2684 = vmatmul.mubr.msk.bf16.vlgmr.msra.gmra.mrb[20].mxu0 %vm1104_vm6, %v2939_v12  ;;  %1555 = vmatpush1.bf16.msra.mxu1 %v1536_v30  ;;  %v2947_v12 = vld [vmem:[%s3459_s8 + $0x44] ss:$0 sps:$4 sm:$0xff]  }
 0x263   : > { %v1225_v32 = vpop.permute.xlu0 %1224  ;;  %2555 = vmatmul.mubr.msk.bf16.gmra.mrb[8].mxu1 %vm1104_vm6, %v2941_v28  ;;  %2691 = vmatprep.mubr.msk.bf16.mxu0 %vm1104_vm6, %v2936_v59 }
 0x264   : > { %v1530_v31 = vpop.permute.xlu1 %1529  ;;  %v1237_v34 = vsel %vm1234_vm5, %v3266_v49, %v1225_v32  ;;  %1586 = vmatprep.mubr.bf16.mxu1 %v2962_v0 }
 0x265   : > { %2687 = vmatprep.subr.bf16.mxu0 %v1237_v34  ;;  %v1540_v36 = vsel %vm1535_vm8, %v1530_v31, %v1532_v27 }
 0x266   : > { %2688 = vmatpush3.bf16.msra.mxu0 %v1237_v34  ;;  %1556 = vmatprep.subr.bf16.mxu1 %v1540_v36 }
 0x267   : > { %v1233_v35 = vpop.permute.xlu0 %1232 }
 0x268   : > { %v1528_v38 = vpop.permute.xlu1 %1527  ;;  %v1240_v39 = vsel %vm1234_vm5, %v3273_v56, %v1233_v35 }
 0x269   : > { %v1539_v33 = vsel %vm1535_vm8, %v1528_v38, %v1530_v31  ;;  %2689 = vmatprep.subr.bf16.mxu0 %v1240_v39 }
 0x26a   : > { %2690 = vmatpush3.bf16.msra.mxu0 %v1240_v39  ;;  %1557 = vmatpush1.bf16.msra.mxu1 %v1539_v33  ;;  %v2949_v39 = vld [vmem:[%s3459_s8 + $0x50] ss:$0 sps:$4 sm:$0xff]  }
 0x26b   : > { %v1379_v42 = vpop.permute.xlu0 %1378  ;;  %1680 = vmatprep.subr.bf16.mxu1 %v3170_v2 }
 0x26c   : > { %v1371_v43 = vpop.permute.xlu1 %1370  ;;  %v1386_v46 = vsel %vm1380_vm7, %v1377_v14, %v1379_v42 }
 0x26d   : > { %2563 = vmatmul.mubr.msk.bf16.vlgmr.msra.gmra.mrb[4].mxu1 %vm1104_vm6, %v2942_v40  ;;  %v1383_v44 = vsel %vm1380_vm7, %v3281_v60, %v1371_v43  ;;  %v2945_v60 = vld [vmem:[%s3459_s8 + $0x38] ss:$0 sps:$4 sm:$0xff]  }
 0x26e   : > { %2692 = vmatmul.mubr.msk.bf16.vlgmr.msra.gmra.mrb[20].mxu0 %vm1104_vm6, %v3295_v9  ;;  %2695 = vmatprep.subr.bf16.mxu0 %v1383_v44 }
 0x26f   : > { %1681 = vmatpush1.bf16.msra.mxu1 %v3168_v61  ;;  %v1534_v45 = vpop.permute.xlu0 %1533  ;;  %2696 = vmatpush3.bf16.msra.mxu0 %v1383_v44  ;;  %v2950_v44 = vld [vmem:[%s3459_s8 + $0x54] sm:$0xff]  }
 0x270   : > { %1682 = vmatprep.subr.bf16.mxu1 %v3183_v21  ;;  %2697 = vmatprep.subr.bf16.mxu0 %v1386_v46  ;;  %v1819_v2 = vpop.permute.xlu1 %1818  ;;  %v1541_v53 = vsel %vm1535_vm8, %v1532_v27, %v1534_v45 }
 0x271   : > { %1596 = vmatprep.mubr.bf16.mxu1 %v2962_v0  ;;  %2699 = vmatprep.mubr.msk.bf16.mxu0 %vm1104_vm6, %v2940_v19 }
 0x273   : > { %1683 = vmatpush1.bf16.msra.mxu1 %v3180_v17  ;;  %v1821_v61 = vpop.permute.xlu0 %1820  ;;  %2698 = vmatpush3.bf16.msra.mxu0 %v1386_v46 }
 0x274   : > { %v1526_v48 = vpop.permute.xlu1 %1525  ;;  %v1834_v49 = vsel %vm1832_vm9, %v1819_v2, %v1821_v61 }
 0x275   : > { %2564 = vmatmul.mubr.msk.bf16.gmra.mrb[8].mxu1 %vm1104_vm6, %v2943_v47  ;;  %1851 = vmatprep.subr.bf16.mxu1 %v1834_v49  ;;  %v1538_v21 = vsel %vm1535_vm8, %v1524_v23, %v1526_v48 }
 0x276   : > { %2703 = vmatprep.subr.bf16.mxu0 %v1538_v21  ;;  %1712 = vmatprep.mubr.bf16.mxu1 %v2962_v0 }
 0x277   : > { %v1827_v50 = vpop.permute.xlu0 %1826 }
 0x278   : > { %v1817_v51 = vpop.permute.xlu1 %1816 }
 0x279   : > { %v1833_v55 = vsel %vm1832_vm9, %v1817_v51, %v1819_v2  ;;  %v2952_v51 = vld [vmem:[%s3459_s8 + $0x60] sm:$0xff]  }
 0x27a   : > { %2700 = vmatmul.mubr.msk.bf16.vlgmr.msra.gmra.mrb[20].mxu0 %vm1104_vm6, %v2941_v28 }
 0x27b   : > { %2704 = vmatpush3.bf16.msra.mxu0 %v1538_v21  ;;  %v1825_v17 = vpop.permute.xlu0 %1824  ;;  %2707 = vmatprep.mubr.msk.bf16.mxu0 %vm1104_vm6, %v2942_v40  ;;  %v2951_v21 = vld [vmem:[%s3459_s8 + $0x5c] ss:$0 sps:$4 sm:$0xff]  }
 0x27c   : > { %2705 = vmatprep.subr.bf16.mxu0 %v1541_v53  ;;  %v1829_v54 = vpop.permute.xlu1 %1828  ;;  %v1836_v59 = vsel %vm1832_vm9, %v1825_v17, %v1827_v50  ;;  %v2953_v17 = vld [vmem:[%s3459_s8 + $0x68] ss:$0 sps:$4 sm:$0xff]  }
 0x27d   : > { %2572 = vmatmul.mubr.msk.bf16.vlgmr.msra.gmra.mrb[4].mxu1 %vm1104_vm6, %v2944_v52  ;;  %v1837_v56 = vsel %vm1832_vm9, %v1827_v50, %v1829_v54 }
 0x27e   : > { %1852 = vmatpush1.bf16.msra.mxu1 %v1833_v55  ;;  %1722 = vmatprep.mubr.bf16.mxu1 %v2962_v0 }
 0x27f   : > { %2706 = vmatpush3.bf16.msra.mxu0 %v1541_v53  ;;  %1853 = vmatprep.subr.bf16.mxu1 %v1837_v56  ;;  %v2903_v57 = vpop.permute.xlu0 %2902 }
 0x280   : > { %2711 = vmatprep.subr.bf16.mxu0 %v3197_v37  ;;  %v1974_v58 = vpop.permute.xlu1 %1973  ;;  %v2904_v3 = vunpack.i.l.bf16 %v2903_v57  ;;  %v2905_v11 = vunpack.i.h.bf16 %v2903_v57 }
 0x282   : > { %1854 = vmatpush1.bf16.msra.mxu1 %v1836_v59  ;;  %v1835_v8 = vsel %vm1832_vm9, %v1821_v61, %v2904_v3  ;;  %v1838_v19 = vsel %vm1832_vm9, %v1829_v54, %v2905_v11 }
 0x283   : > { %v1976_v62 = vpop.permute.xlu0 %1975 }
 0x284   : > { %v1972_v63 = vpop.permute.xlu1 %1971  ;;  %v1989_v1 = vsel %vm1987_vm10, %v1974_v58, %v1976_v62 }
 0x285   : > { %2573 = vmatmul.mubr.msk.bf16.gmra.mrb[8].mxu1 %vm1104_vm6, %v2945_v60  ;;  %2006 = vmatprep.subr.bf16.mxu1 %v1989_v1  ;;  %v1988_v10 = vsel %vm1987_vm10, %v1972_v63, %v1974_v58 }
 0x286   : > { %2708 = vmatmul.mubr.msk.bf16.vlgmr.msra.gmra.mrb[20].mxu0 %vm1104_vm6, %v2943_v47  ;;  %1883 = vmatprep.mubr.bf16.mxu1 %v2962_v0 }
 0x287   : > { %2712 = vmatpush3.bf16.msra.mxu0 %v3197_v37  ;;  %v1984_v4 = vpop.permute.xlu0 %1983  ;;  %2715 = vmatprep.mubr.msk.bf16.mxu0 %vm1104_vm6, %v2944_v52 }
 0x288   : > { %2713 = vmatprep.subr.bf16.mxu0 %v3193_v41  ;;  %v1982_v5 = vpop.permute.xlu1 %1981 }
 0x289   : > { %v1992_v37 = vsel %vm1987_vm10, %v1982_v5, %v1984_v4 }
 0x28b   : > { %2714 = vmatpush3.bf16.msra.mxu0 %v3193_v41  ;;  %v2908_v7 = vpop.permute.xlu0 %2907 }
 0x28c   : > { %2719 = vmatprep.subr.bf16.mxu0 %v1835_v8  ;;  %v1980_v9 = vpop.permute.xlu1 %1979  ;;  %v2909_v16 = vunpack.i.l.bf16 %v2908_v7  ;;  %v2910_v26 = vunpack.i.h.bf16 %v2908_v7 }
 0x28d   : > { %2581 = vmatmul.mubr.msk.bf16.vlgmr.msra.gmra.mrb[4].mxu1 %vm1104_vm6, %v2946_v6  ;;  %v1991_v41 = vsel %vm1987_vm10, %v1980_v9, %v1982_v5 }
 0x28e   : > { %2007 = vmatpush1.bf16.msra.mxu1 %v1988_v10  ;;  %1893 = vmatprep.mubr.bf16.mxu1 %v2962_v0  ;;  %v1990_v23 = vsel %vm1987_vm10, %v1976_v62, %v2909_v16  ;;  %v1993_v31 = vsel %vm1987_vm10, %v1984_v4, %v2910_v26 }
 0x28f   : > { %2008 = vmatprep.subr.bf16.mxu1 %v1992_v37  ;;  %v2131_v13 = vpop.permute.xlu0 %2130 }
 0x290   : > { %v2129_v14 = vpop.permute.xlu1 %2128 }
 0x291   : > { %v2144_v15 = vsel %vm2142_vm11, %v2129_v14, %v2131_v13 }
 0x292   : > { %2009 = vmatpush1.bf16.msra.mxu1 %v1991_v41  ;;  %2716 = vmatmul.mubr.msk.bf16.vlgmr.msra.gmra.mrb[20].mxu0 %vm1104_vm6, %v2945_v60 }
 0x293   : > { %2720 = vmatpush3.bf16.msra.mxu0 %v1835_v8  ;;  %2161 = vmatprep.subr.bf16.mxu1 %v2144_v15  ;;  %v2137_v18 = vpop.permute.xlu0 %2136 }
 0x294   : > { %2721 = vmatprep.subr.bf16.mxu0 %v1838_v19  ;;  %v2127_v20 = vpop.permute.xlu1 %2126  ;;  %2723 = vmatprep.mubr.msk.bf16.mxu0 %vm1104_vm6, %v2946_v6 }
 0x295   : > { %2582 = vmatmul.mubr.msk.bf16.gmra.mrb[8].mxu1 %vm1104_vm6, %v2947_v12  ;;  %v2143_v29 = vsel %vm2142_vm11, %v2127_v20, %v2129_v14 }
 0x296   : > { %2038 = vmatprep.mubr.bf16.mxu1 %v2962_v0 }
 0x297   : > { %2722 = vmatpush3.bf16.msra.mxu0 %v1838_v19  ;;  %v2135_v22 = vpop.permute.xlu0 %2134 }
 0x298   : > { %2727 = vmatprep.subr.bf16.mxu0 %v1990_v23  ;;  %v2139_v24 = vpop.permute.xlu1 %2138  ;;  %v2146_v35 = vsel %vm2142_vm11, %v2135_v22, %v2137_v18 }
 0x299   : > { %v2147_v30 = vsel %vm2142_vm11, %v2137_v18, %v2139_v24 }
 0x29b   : > { %v2284_v27 = vpop.permute.xlu0 %2283 }
 0x29c   : > { %v2913_v28 = vpop.permute.xlu1 %2912 }
 0x29d   : > { %2590 = vmatmul.mubr.msk.bf16.vlgmr.msra.gmra.mrb[4].mxu1 %vm1104_vm6, %v2948_v25  ;;  %v2914_v32 = vunpack.i.l.bf16 %v2913_v28  ;;  %v2915_v42 = vunpack.i.h.bf16 %v2913_v28 }
 0x29e   : > { %2162 = vmatpush1.bf16.msra.mxu1 %v2143_v29  ;;  %2724 = vmatmul.mubr.msk.bf16.vlgmr.msra.gmra.mrb[20].mxu0 %vm1104_vm6, %v2947_v12 }
 0x29f   : > { %2728 = vmatpush3.bf16.msra.mxu0 %v1990_v23  ;;  %2163 = vmatprep.subr.bf16.mxu1 %v2147_v30  ;;  %v2282_v34 = vpop.permute.xlu0 %2281  ;;  %v2145_v33 = vsel %vm2142_vm11, %v2131_v13, %v2914_v32  ;;  %v2148_v45 = vsel %vm2142_vm11, %v2139_v24, %v2915_v42 }
 0x2a0   : > { %2729 = vmatprep.subr.bf16.mxu0 %v1993_v31  ;;  %v2286_v36 = vpop.permute.xlu1 %2285  ;;  %2048 = vmatprep.mubr.bf16.mxu1 %v2962_v0  ;;  %v2298_v2 = vsel %vm2297_vm12, %v2282_v34, %v2284_v27 }
 0x2a1   : > { %v2299_v38 = vsel %vm2297_vm12, %v2284_v27, %v2286_v36  ;;  %2731 = vmatprep.mubr.msk.bf16.mxu0 %vm1104_vm6, %v2948_v25 }
 0x2a2   : > { %2164 = vmatpush1.bf16.msra.mxu1 %v2146_v35 }
 0x2a3   : > { %2730 = vmatpush3.bf16.msra.mxu0 %v1993_v31  ;;  %2316 = vmatprep.subr.bf16.mxu1 %v2299_v38  ;;  %v2294_v40 = vpop.permute.xlu0 %2293 }
 0x2a4   : > { %2735 = vmatprep.subr.bf16.mxu0 %v2145_v33  ;;  %v2292_v43 = vpop.permute.xlu1 %2291 }
 0x2a5   : > { %2591 = vmatmul.mubr.msk.bf16.gmra.mrb[8].mxu1 %vm1104_vm6, %v2949_v39  ;;  %v2302_v61 = vsel %vm2297_vm12, %v2292_v43, %v2294_v40 }
 0x2a6   : > { %2193 = vmatprep.mubr.bf16.mxu1 %v2962_v0 }
 0x2a7   : > { %v2288_v46 = vpop.permute.xlu0 %2287 }
 0x2a8   : > { %v2290_v47 = vpop.permute.xlu1 %2289  ;;  %v2300_v48 = vsel %vm2297_vm12, %v2286_v36, %v2288_v46 }
 0x2a9   : > { %v2301_v49 = vsel %vm2297_vm12, %v2290_v47, %v2292_v43 }
 0x2aa   : > { %2732 = vmatmul.mubr.msk.bf16.vlgmr.msra.gmra.mrb[20].mxu0 %vm1104_vm6, %v2949_v39 }
 0x2ab   : > { %2736 = vmatpush3.bf16.msra.mxu0 %v2145_v33  ;;  %2739 = vmatprep.mubr.msk.bf16.mxu0 %vm1104_vm6, %v2950_v44 }
 0x2ac   : > { %2737 = vmatprep.subr.bf16.mxu0 %v2148_v45  ;;  %v2296_v50 = vpop.permute.xlu1 %2295 }
 0x2ad   : > { %2599 = vmatmul.mubr.msk.bf16.vlgmr.msra.gmra.mrb[4].mxu1 %vm1104_vm6, %v2950_v44  ;;  %v2303_v52 = vsel %vm2297_vm12, %v2294_v40, %v2296_v50 }
 0x2ae   : > { %2317 = vmatpush1.bf16.msra.mxu1 %v2298_v2  ;;  %2203 = vmatprep.mubr.bf16.mxu1 %v2962_v0 }
 0x2af   : > { %2738 = vmatpush3.bf16.msra.mxu0 %v2148_v45  ;;  %2318 = vmatprep.subr.bf16.mxu1 %v2302_v61 }
 0x2b0   : > { %2743 = vmatprep.subr.bf16.mxu0 %v2300_v48 }
 0x2b2   : > { %2319 = vmatpush1.bf16.msra.mxu1 %v2301_v49 }
 0x2b5   : > { %2600 = vmatmul.mubr.msk.bf16.gmra.mrb[8].mxu1 %vm1104_vm6, %v2951_v21 }
 0x2b6   : > { %2740 = vmatmul.mubr.msk.bf16.vlgmr.msra.gmra.mrb[20].mxu0 %vm1104_vm6, %v2951_v21  ;;  %2348 = vmatprep.mubr.bf16.mxu1 %v2962_v0 }
 0x2b7   : > { %2744 = vmatpush3.bf16.msra.mxu0 %v2300_v48  ;;  %2747 = vmatprep.mubr.msk.bf16.mxu0 %vm1104_vm6, %v2952_v51 }
 0x2b8   : > { %2745 = vmatprep.subr.bf16.mxu0 %v2303_v52 }
 0x2bb   : > { %2746 = vmatpush3.bf16.msra.mxu0 %v2303_v52 }
 0x2bd   : > { %2608 = vmatmul.mubr.msk.bf16.vlgmr.msra.gmra.mrb[4].mxu1 %vm1104_vm6, %v2952_v51 }
 0x2be   : > { %2358 = vmatprep.mubr.bf16.mxu1 %v2962_v0 }
 0x2c2   : > { %2748 = vmatmul.mubr.msk.bf16.vlgmr.msra.gmra.mrb[20].mxu0 %vm1104_vm6, %v2953_v17 }
 0x2c5   : > { %2609 = vmatmul.mubr.msk.bf16.gmra.mrb[8].mxu1 %vm1104_vm6, %v2953_v17 }
 0x324   : > { %v1145_v53 = vpop.f32.mrb[12].mxu0 }
 0x325   : > { %v1147_v54 = vpop.f32.mrb[13].mxu0 }
 0x326   : > { %v1149_v55 = vpop.f32.mrb[14].mxu0 }
 0x327   : > { %v1151_v56 = vpop.f32.mrb[15].mxu0 }
 0x32c   : > { %v1155_v57 = vpop.f32.mrb[16].mxu0 }
 0x32d   : > { %v1157_v58 = vpop.f32.mrb[17].mxu0 }
 0x32e   : > { %v1159_v59 = vpop.f32.mrb[18].mxu0 }
 0x32f   : > { %v1160_v60 = vpop.f32.mrb[19].mxu0 }
 0x390   : > { %v2350_v62 = vpop.f32.mrb[4].mxu1 }
 0x391   : > { %v2755_v63 = vadd.f32 %v2350_v62, %v1145_v53  ;;  %v2352_v0 = vpop.f32.mrb[5].mxu1 }
 0x392   : > { %v2756_v1 = vadd.f32 %v2352_v0, %v1147_v54  ;;  %v2354_v3 = vpop.f32.mrb[6].mxu1 }
 0x393   : > { %2424 = vst [vmem:[%s352_s21] sm:$0xff] %v2755_v63  ;;  %v2757_v4 = vadd.f32 %v2354_v3, %v1149_v55  ;;  %v2356_v5 = vpop.f32.mrb[7].mxu1 }
 0x394   : > { %2425 = vst [vmem:[%s352_s21 + $0x8] sm:$0xff] %v2756_v1  ;;  %v2758_v6 = vadd.f32 %v2356_v5, %v1151_v56 }
 0x395   : > { %2427 = vst [vmem:[%s352_s21 + $0x18] sm:$0xff] %v2757_v4  ;;  %v2749_v7 = vpop.f32.mrb[20].mxu0 }
 0x396   : > { %2428 = vst [vmem:[%s352_s21 + $0x20] sm:$0xff] %v2758_v6  ;;  %2432 = vst [vmem:[%s352_s21 + $0x40] sm:$0xff] %v2749_v7  ;;  %v2401_v8 = vpop.f32.mrb[21].mxu0 }
 0x397   : > { %2426 = vst [vmem:[%s352_s21 + $0x10] sm:$0xff] %v2401_v8  ;;  %v2750_v9 = vpop.f32.mrb[22].mxu0 }
 0x398   : > { %v2360_v10 = vpop.f32.mrb[8].mxu1  ;;  %v2404_v37 = vpop.f32.mrb[23].mxu0 }
 0x399   : > { %v2759_v11 = vadd.f32 %v2360_v10, %v1155_v57  ;;  %2429 = vst [vmem:[%s352_s21 + $0x28] sm:$0xff] %v2404_v37  ;;  %v2362_v13 = vpop.f32.mrb[9].mxu1 }
 0x39a   : > { %v2760_v14 = vadd.f32 %v2362_v13, %v1157_v58  ;;  %v2364_v41 = vpop.f32.mrb[10].mxu1 }
 0x39b   : > { %2430 = vst [vmem:[%s352_s21 + $0x30] sm:$0xff] %v2759_v11  ;;  %v2365_v15 = vpop.f32.mrb[11].mxu1 }
 0x39c   : > { %2431 = vst [vmem:[%s352_s21 + $0x38] sm:$0xff] %v2760_v14 }
 0x39d PF: > { %s19_s30 = sadd.s32 1, %s2960_s30  }
 0x39e   : > { %p16_p4 = scmp.ge.s32.totalorder %s19_s30, 4  }
 0x3a0   :  { %18 = sbr.rel (!%p16_p4) target bundleno = 1 (0x1), region = 97 }

</bundles_post_ra>
